<compile_context>
chip_gen: v6e
topology: v6e:2x2x1
jax: 0.10.0
libtpu: 0.0.40
codegen_flags: <defaults>
</compile_context>

<pallas_src>
import jax
import jax.numpy as jnp
from jax.experimental import pallas as pl
from jax.experimental.pallas import tpu as pltpu


# ---------------------------------------------------------------------------
# Kernel 1: stacked-LSTM recurrence over the whole target sequence.
# Grid = (n_steps,), "arbitrary" (recurrence).  hidden/cell are resident
# output blocks (constant block index) carried in VMEM across grid steps.
# ---------------------------------------------------------------------------
def _make_lstm_seq_kernel(n_layers):
    def kernel(x_ref, h0_ref, c0_ref, wcat0_ref, *rest):
        """
        x_ref:   [1, B, E]        bf16 embedded teacher-forced token for step t
        h0/c0:   [L, B, H]        f32 initial hidden / cell (read at t == 0)
        wcat0:   [E + H, 4H]      bf16 = [W_ih0^T ; W_hh0^T]
        wcatr:   [L-1, 2H, 4H]    bf16 (only present when n_layers > 1)
        b:       [L, 1, 4H]       f32 = b_ih + b_hh
        outputs: htop [1, B, H] bf16 per step; h, c [L, B, H] f32 resident state
        """
        if n_layers > 1:
            wcatr_ref, b_ref, htop_ref, h_ref, c_ref = rest
        else:
            b_ref, htop_ref, h_ref, c_ref = rest
            wcatr_ref = None
        hid = h_ref.shape[-1]
        t = pl.program_id(0)

        @pl.when(t == 0)
        def _():
            h_ref[...] = h0_ref[...]
            c_ref[...] = c0_ref[...]

        x = x_ref[0]                                          # bf16 [B, E]
        for l in range(n_layers):                             # static unroll (small L)
            h_prev = h_ref[l]                                 # f32 [B, H]
            c_prev = c_ref[l]
            w_cat = wcat0_ref[...] if l == 0 else wcatr_ref[l - 1]
            xin = jnp.concatenate([x, h_prev.astype(jnp.bfloat16)], axis=-1)
            gates = (jnp.dot(xin, w_cat, preferred_element_type=jnp.float32)
                     + b_ref[l])                              # f32 [B, 4H]
            # torch.nn.LSTM gate order i, f, g, o; slices lane-aligned (H % 128 == 0).
            i = jax.nn.sigmoid(gates[:, 0 * hid:1 * hid])
            f = jax.nn.sigmoid(gates[:, 1 * hid:2 * hid])
            g = jnp.tanh(gates[:, 2 * hid:3 * hid])
            o = jax.nn.sigmoid(gates[:, 3 * hid:4 * hid])
            c_new = f * c_prev + i * g                        # f32 elementwise (v5e-safe)
            h_new = o * jnp.tanh(c_new)
            h_ref[l] = h_new
            c_ref[l] = c_new
            x = h_new.astype(jnp.bfloat16)                    # inter-layer dropout == identity
        htop_ref[0] = x

    return kernel


# ---------------------------------------------------------------------------
# Kernel 2: batched fc_out projection over all steps, tiled over the vocab axis.
# ---------------------------------------------------------------------------
def fc_vocab_kernel(h_ref, w_ref, b_ref, pred_ref):
    """h [R, H] bf16, w [H, TILE_V] bf16, b [1, TILE_V] f32 -> pred [R, TILE_V] f32."""
    pred_ref[...] = (jnp.dot(h_ref[...], w_ref[...],
                             preferred_element_type=jnp.float32)
                     + b_ref[...])


def _pick_tile_v(vocab, max_tile=2048):
    """Largest lane-dense (multiple of 128) divisor of vocab <= max_tile,
    preferring >= 2 tiles so the parallel vocab axis can shard across the two
    TensorCores on v7x."""
    cands = [t for t in range(128, min(max_tile, vocab) + 1, 128) if vocab % t == 0]
    if not cands:
        return vocab                      # tiny / unaligned vocab: one full tile
    multi = [t for t in cands if vocab // t >= 2]
    return max(multi) if multi else max(cands)


# ---------------------------------------------------------------------------
# Forward pass: mirrors Seq2Seq.forward with teacher_forcing_ratio == 1.
# ---------------------------------------------------------------------------
def seq2seq_forward(trg_tokens, hidden, cell, params, *, max_tile_v=2048):
    """trg_tokens [T, B] int32; (hidden, cell) [L, B, H] stand in for the
    encoder output.  Returns (outputs [T-1, B, V], hidden, cell)."""
    trg_len, batch = trg_tokens.shape
    n_layers, _, hid = hidden.shape
    emb_dim = params["embedding"].shape[1]
    vocab = params["w_fcT"].shape[1]
    n_steps = trg_len - 1
    assert n_steps >= 1
    assert hid % 128 == 0 and emb_dim % 128 == 0, "E and H must be lane-aligned (x128)"
    assert batch % 8 == 0, "batch must fill the 8 sublanes"

    # Teacher forcing with ratio == 1 -> every decoder input is known up front,
    # so one embedding gather covers the whole sequence (amortizes the HBM trip).
    # TODO(synk): the random.random() teacher-forcing / argmax feedback branch is
    # data-dependent host control flow and is not implemented here.
    x_all = jnp.take(params["embedding"], trg_tokens[:-1], axis=0)   # bf16 [T-1, B, E]

    # --- persistent stacked-LSTM recurrence over the time grid ---------------
    # LSTM weights use full-array blocks with a constant index map, so they are
    # DMA'd into VMEM once and stay resident for all T steps.
    # TODO(synk): for production H/L (e.g. H=1024, L=4) block w_cat_rest per
    # layer instead of keeping all layers VMEM-resident (v7x has 64 MiB VMEM).
    lstm_in = [x_all, hidden, cell, params["w_cat0"]]
    lstm_in_specs = [
        pl.BlockSpec((1, batch, emb_dim), lambda t: (t, 0, 0)),
        pl.BlockSpec((n_layers, batch, hid), lambda t: (0, 0, 0)),
        pl.BlockSpec((n_layers, batch, hid), lambda t: (0, 0, 0)),
        pl.BlockSpec(params["w_cat0"].shape, lambda t: (0, 0)),
    ]
    if n_layers > 1:
        lstm_in.append(params["w_cat_rest"])
        lstm_in_specs.append(
            pl.BlockSpec(params["w_cat_rest"].shape, lambda t: (0, 0, 0)))
    lstm_in.append(params["b_gates"])
    lstm_in_specs.append(pl.BlockSpec(params["b_gates"].shape, lambda t: (0, 0, 0)))

    lstm_out_shape = (
        jax.ShapeDtypeStruct((n_steps, batch, hid), jnp.bfloat16),   # h_top per step
        jax.ShapeDtypeStruct((n_layers, batch, hid), jnp.float32),   # final hidden
        jax.ShapeDtypeStruct((n_layers, batch, hid), jnp.float32),   # final cell
    )
    lstm_out_specs = (
        pl.BlockSpec((1, batch, hid), lambda t: (t, 0, 0)),
        pl.BlockSpec((n_layers, batch, hid), lambda t: (0, 0, 0)),
        pl.BlockSpec((n_layers, batch, hid), lambda t: (0, 0, 0)),
    )

    h_tops, h_final, c_final = pl.pallas_call(
        _make_lstm_seq_kernel(n_layers),
        out_shape=lstm_out_shape,
        grid=(n_steps,),
        in_specs=lstm_in_specs,
        out_specs=lstm_out_specs,
        # donate hidden/cell buffers to the final-state outputs
        input_output_aliases={1: 1, 2: 2},
        compiler_params=pltpu.CompilerParams(
            dimension_semantics=("arbitrary",)),                     # recurrence
    )(*lstm_in)

    # --- batched vocab projection over all steps ------------------------------
    rows = n_steps * batch
    h_flat = h_tops.reshape(rows, hid)
    rows_p = ((rows + 7) // 8) * 8                                   # sublane pad
    if rows_p != rows:
        h_flat = jnp.pad(h_flat, ((0, rows_p - rows), (0, 0)))

    tile_v = _pick_tile_v(vocab, max_tile_v)
    # double-buffered weight + bias + output tiles, plus the resident LHS
    fc_bytes = 2 * (hid * tile_v * 2 + rows_p * tile_v * 4 + tile_v * 4) + rows_p * hid * 2
    vmem_limit = int(min(max(2 * fc_bytes + (4 << 20), 16 << 20), 32 << 20))

    pred = pl.pallas_call(
        fc_vocab_kernel,
        out_shape=jax.ShapeDtypeStruct((rows_p, vocab), jnp.float32),
        grid=(vocab // tile_v,),
        in_specs=[
            pl.BlockSpec((rows_p, hid), lambda j: (0, 0)),
            pl.BlockSpec((hid, tile_v), lambda j: (0, j)),
            pl.BlockSpec((1, tile_v), lambda j: (0, j)),
        ],
        out_specs=pl.BlockSpec((rows_p, tile_v), lambda j: (0, j)),
        compiler_params=pltpu.CompilerParams(
            dimension_semantics=("parallel",),
            vmem_limit_bytes=vmem_limit),
    )(h_flat, params["w_fcT"], params["b_fc"])

    outputs = pred[:rows].reshape(n_steps, batch, vocab)
    return outputs, h_final, c_final


# ---------------------------------------------------------------------------
# Parameters: PyTorch-layout raw params + one-time host-side preparation.
# ---------------------------------------------------------------------------
def init_raw_params(key, output_dim, emb_dim, hid_dim, n_layers):
    """PyTorch-layout f32 parameters (nn.Embedding / nn.LSTM / nn.Linear)."""
    k = jax.random.split(key, 8)
    s = 1.0 / float(hid_dim) ** 0.5
    n_rest = max(1, n_layers - 1)
    return dict(
        embedding=jax.random.normal(k[0], (output_dim, emb_dim), jnp.float32),
        w_ih0=jax.random.uniform(k[1], (4 * hid_dim, emb_dim), jnp.float32, -s, s),
        w_ih_rest=jax.random.uniform(k[2], (n_rest, 4 * hid_dim, hid_dim), jnp.float32, -s, s),
        w_hh=jax.random.uniform(k[3], (n_layers, 4 * hid_dim, hid_dim), jnp.float32, -s, s),
        b_ih=jax.random.uniform(k[4], (n_layers, 1, 4 * hid_dim), jnp.float32, -s, s),
        b_hh=jax.random.uniform(k[5], (n_layers, 1, 4 * hid_dim), jnp.float32, -s, s),
        w_fc=jax.random.uniform(k[6], (output_dim, hid_dim), jnp.float32, -s, s),
        b_fc=jax.random.uniform(k[7], (1, output_dim), jnp.float32, -s, s),
    )


def prepare_params(raw, n_layers):
    """One-time host transforms: transpose, concat [W_ih^T ; W_hh^T], pre-sum the
    two LSTM biases, cast matmul operands to bf16 (f32 accumulation / state kept
    inside the kernels)."""
    params = dict(
        embedding=raw["embedding"].astype(jnp.bfloat16),
        w_cat0=jnp.concatenate([raw["w_ih0"].T, raw["w_hh"][0].T],
                               axis=0).astype(jnp.bfloat16),             # [E+H, 4H]
        b_gates=(raw["b_ih"] + raw["b_hh"]).astype(jnp.float32),         # [L, 1, 4H]
        w_fcT=raw["w_fc"].T.astype(jnp.bfloat16),                        # [H, V]
        b_fc=raw["b_fc"].astype(jnp.float32),                            # [1, V]
    )
    if n_layers > 1:
        rest = [jnp.concatenate([raw["w_ih_rest"][l - 1].T, raw["w_hh"][l].T], axis=0)
                for l in range(1, n_layers)]
        params["w_cat_rest"] = jnp.stack(rest, axis=0).astype(jnp.bfloat16)  # [L-1, 2H, 4H]
    return params


# ---------------------------------------------------------------------------
# Pure-JAX reference (same math: bf16 matmul operands, f32 accumulation),
# matching torch.nn.LSTM gate order + nn.Linear semantics.
# ---------------------------------------------------------------------------
def seq2seq_reference(trg_tokens, hidden, cell, params):
    n_layers, _, hid = hidden.shape
    x_all = jnp.take(params["embedding"], trg_tokens[:-1], axis=0)

    def step(carry, x):
        h, c = carry
        hs, cs = [], []
        xl = x
        for l in range(n_layers):
            w_cat = params["w_cat0"] if l == 0 else params["w_cat_rest"][l - 1]
            xin = jnp.concatenate([xl, h[l].astype(jnp.bfloat16)], axis=-1)
            gates = (jnp.dot(xin, w_cat, preferred_element_type=jnp.float32)
                     + params["b_gates"][l])
            i, f, g, o = jnp.split(gates, 4, axis=-1)
            i, f, o = jax.nn.sigmoid(i), jax.nn.sigmoid(f), jax.nn.sigmoid(o)
            g = jnp.tanh(g)
            cn = f * c[l] + i * g
            hn = o * jnp.tanh(cn)
            hs.append(hn)
            cs.append(cn)
            xl = hn.astype(jnp.bfloat16)
        return (jnp.stack(hs), jnp.stack(cs)), xl

    (h_T, c_T), h_tops = jax.lax.scan(step, (hidden, cell), x_all)
    n_steps, batch = h_tops.shape[0], h_tops.shape[1]
    pred = (jnp.dot(h_tops.reshape(n_steps * batch, hid), params["w_fcT"],
                    preferred_element_type=jnp.float32) + params["b_fc"])
    return pred.reshape(n_steps, batch, -1), h_T, c_T


if __name__ == "__main__":
    # Small but lane-aligned shapes: E, H multiples of 128; vocab a multiple of
    # 128 (tile picker handles the rest); batch == 8 sublanes.
    OUTPUT_DIM, EMB_DIM, HID_DIM, N_LAYERS = 2048, 128, 128, 2
    BATCH, TRG_LEN = 8, 6

    key = jax.random.PRNGKey(0)
    k_par, k_tok, k_h, k_c = jax.random.split(key, 4)

    raw = init_raw_params(k_par, OUTPUT_DIM, EMB_DIM, HID_DIM, N_LAYERS)
    params = prepare_params(raw, N_LAYERS)

    trg = jax.random.randint(k_tok, (TRG_LEN, BATCH), 0, OUTPUT_DIM, dtype=jnp.int32)
    # NOTE: the encoder LSTM over src is not implemented here; its output
    # (hidden, cell) is provided directly, matching the previous versions.
    hidden = jax.random.normal(k_h, (N_LAYERS, BATCH, HID_DIM), jnp.float32)
    cell = jax.random.normal(k_c, (N_LAYERS, BATCH, HID_DIM), jnp.float32)

    fwd = jax.jit(seq2seq_forward)
    outs, h_T, c_T = fwd(trg, hidden, cell, params)
    jax.block_until_ready((outs, h_T, c_T))

    outs_r, h_Tr, c_Tr = jax.jit(seq2seq_reference)(trg, hidden, cell, params)
    jax.block_until_ready((outs_r, h_Tr, c_Tr))

    assert outs.shape == (TRG_LEN - 1, BATCH, OUTPUT_DIM)
    assert h_T.shape == (N_LAYERS, BATCH, HID_DIM)
    assert c_T.shape == (N_LAYERS, BATCH, HID_DIM)
    assert jnp.allclose(outs, outs_r, atol=5e-3, rtol=5e-3)
    assert jnp.allclose(h_T, h_Tr, atol=5e-3, rtol=5e-3)
    assert jnp.allclose(c_T, c_Tr, atol=5e-3, rtol=5e-3)

    print("KERNEL_OK")
</pallas_src>

<mosaic_0001>
module attributes {stable_mosaic.version = 11 : i64} {
  func.func @fc_vocab_kernel(%arg0: i32, %arg1: memref<40x128xbf16, #tpu.memory_space<vmem>>, %arg2: memref<128x1024xbf16, #tpu.memory_space<vmem>>, %arg3: memref<1x1024xf32, #tpu.memory_space<vmem>>, %arg4: memref<40x1024xf32, #tpu.memory_space<vmem>>) attributes {dimension_semantics = [#tpu.dimension_semantics<parallel>], iteration_bounds = array<i64: 2>, scalar_prefetch = 0 : i64, scratch_operands = 0 : i64, tpu.core_type = #tpu.core_type<tc>, window_params = [{pipeline_mode = #tpu.pipeline_mode<synchronous>, transform_indices = @transform_0, window_bounds = array<i64: 40, 128>}, {transform_indices = @transform_1, window_bounds = array<i64: 128, 1024>}, {transform_indices = @transform_2, window_bounds = array<i64: 1, 1024>}, {transform_indices = @transform_3, window_bounds = array<i64: 40, 1024>}]} {
    %c0 = arith.constant 0 : index
    %c0_0 = arith.constant 0 : index
    %0 = vector.load %arg1[%c0, %c0_0] : memref<40x128xbf16, #tpu.memory_space<vmem>>, vector<40x128xbf16>
    %c0_1 = arith.constant 0 : index
    %c0_2 = arith.constant 0 : index
    %1 = vector.load %arg2[%c0_1, %c0_2] : memref<128x1024xbf16, #tpu.memory_space<vmem>>, vector<128x1024xbf16>
    %cst = arith.constant dense<0.000000e+00> : vector<40x1024xf32>
    %2 = tpu.matmul %0, %1, %cst {dimension_numbers = #tpu.dot_dimension_numbers<[1], [0], [0], [1], [0, 0, 1, 1], [], []>} : vector<40x128xbf16>, vector<128x1024xbf16>, vector<40x1024xf32> -> vector<40x1024xf32>
    %c0_3 = arith.constant 0 : index
    %c0_4 = arith.constant 0 : index
    %3 = vector.load %arg3[%c0_3, %c0_4] : memref<1x1024xf32, #tpu.memory_space<vmem>>, vector<1x1024xf32>
    %4 = vector.broadcast %3 : vector<1x1024xf32> to vector<40x1024xf32>
    %5 = arith.addf %2, %4 : vector<40x1024xf32>
    %c0_5 = arith.constant 0 : index
    %c0_6 = arith.constant 0 : index
    %6 = vector.load %arg4[%c0_5, %c0_6] : memref<40x1024xf32, #tpu.memory_space<vmem>>, vector<40x1024xf32>
    tpu.vector_store %arg4[%c0_5, %c0_6], %5 {strides = array<i32>} : memref<40x1024xf32, #tpu.memory_space<vmem>>, vector<40x1024xf32>,
    return
  }
  func.func @transform_0(%arg0: i32) -> (i32, i32) {
    %c0_i32 = arith.constant 0 : i32
    %c0_i32_0 = arith.constant 0 : i32
    %c0_i32_1 = arith.constant 0 : i32
    return %c0_i32, %c0_i32_0 : i32, i32
  }
  func.func @transform_1(%arg0: i32) -> (i32, i32) {
    %c0_i32 = arith.constant 0 : i32
    %c0_i32_0 = arith.constant 0 : i32
    return %c0_i32, %arg0 : i32, i32
  }
  func.func @transform_2(%arg0: i32) -> (i32, i32) {
    %c0_i32 = arith.constant 0 : i32
    %c0_i32_0 = arith.constant 0 : i32
    return %c0_i32, %arg0 : i32, i32
  }
  func.func @transform_3(%arg0: i32) -> (i32, i32) {
    %c0_i32 = arith.constant 0 : i32
    %c0_i32_0 = arith.constant 0 : i32
    return %c0_i32, %arg0 : i32, i32
  }
}

module attributes {stable_mosaic.version = 11 : i64} {
  func.func @kernel(%arg0: i32, %arg1: memref<1x8x128xbf16, #tpu.memory_space<vmem>>, %arg2: memref<2x8x128xf32, #tpu.memory_space<vmem>>, %arg3: memref<2x8x128xf32, #tpu.memory_space<vmem>>, %arg4: memref<256x512xbf16, #tpu.memory_space<vmem>>, %arg5: memref<1x256x512xbf16, #tpu.memory_space<vmem>>, %arg6: memref<2x1x512xf32, #tpu.memory_space<vmem>>, %arg7: memref<1x8x128xbf16, #tpu.memory_space<vmem>>, %arg8: memref<2x8x128xf32, #tpu.memory_space<vmem>>, %arg9: memref<2x8x128xf32, #tpu.memory_space<vmem>>) attributes {dimension_semantics = [#tpu.dimension_semantics<arbitrary>], iteration_bounds = array<i64: 5>, scalar_prefetch = 0 : i64, scratch_operands = 0 : i64, tpu.core_type = #tpu.core_type<tc>, window_params = [{transform_indices = @transform_0, window_bounds = array<i64: 1, 8, 128>}, {pipeline_mode = #tpu.pipeline_mode<synchronous>, transform_indices = @transform_1, window_bounds = array<i64: 2, 8, 128>}, {pipeline_mode = #tpu.pipeline_mode<synchronous>, transform_indices = @transform_2, window_bounds = array<i64: 2, 8, 128>}, {pipeline_mode = #tpu.pipeline_mode<synchronous>, transform_indices = @transform_3, window_bounds = array<i64: 256, 512>}, {pipeline_mode = #tpu.pipeline_mode<synchronous>, transform_indices = @transform_4, window_bounds = array<i64: 1, 256, 512>}, {pipeline_mode = #tpu.pipeline_mode<synchronous>, transform_indices = @transform_5, window_bounds = array<i64: 2, 1, 512>}, {transform_indices = @transform_6, window_bounds = array<i64: 1, 8, 128>}, {pipeline_mode = #tpu.pipeline_mode<synchronous>, transform_indices = @transform_7, window_bounds = array<i64: 2, 8, 128>}, {pipeline_mode = #tpu.pipeline_mode<synchronous>, transform_indices = @transform_8, window_bounds = array<i64: 2, 8, 128>}]} {
    %c0_i32 = arith.constant 0 : i32
    %0 = arith.cmpi eq, %arg0, %c0_i32 : i32
    %1 = arith.extui %0 : i1 to i32
    %c0_i32_0 = arith.constant 0 : i32
    %2 = arith.cmpi ne, %1, %c0_i32_0 : i32
    scf.if %2 {
      %c0_47 = arith.constant 0 : index
      %c0_48 = arith.constant 0 : index
      %c0_49 = arith.constant 0 : index
      %97 = vector.load %arg2[%c0_47, %c0_48, %c0_49] : memref<2x8x128xf32, #tpu.memory_space<vmem>>, vector<2x8x128xf32>
      %c0_50 = arith.constant 0 : index
      %c0_51 = arith.constant 0 : index
      %c0_52 = arith.constant 0 : index
      %98 = vector.load %arg8[%c0_50, %c0_51, %c0_52] : memref<2x8x128xf32, #tpu.memory_space<vmem>>, vector<2x8x128xf32>
      tpu.vector_store %arg8[%c0_50, %c0_51, %c0_52], %97 {strides = array<i32>} : memref<2x8x128xf32, #tpu.memory_space<vmem>>, vector<2x8x128xf32>,
      %c0_53 = arith.constant 0 : index
      %c0_54 = arith.constant 0 : index
      %c0_55 = arith.constant 0 : index
      %99 = vector.load %arg3[%c0_53, %c0_54, %c0_55] : memref<2x8x128xf32, #tpu.memory_space<vmem>>, vector<2x8x128xf32>
      %c0_56 = arith.constant 0 : index
      %c0_57 = arith.constant 0 : index
      %c0_58 = arith.constant 0 : index
      %100 = vector.load %arg9[%c0_56, %c0_57, %c0_58] : memref<2x8x128xf32, #tpu.memory_space<vmem>>, vector<2x8x128xf32>
      tpu.vector_store %arg9[%c0_56, %c0_57, %c0_58], %99 {strides = array<i32>} : memref<2x8x128xf32, #tpu.memory_space<vmem>>, vector<2x8x128xf32>,
    } else {
    }
    %c0 = arith.constant 0 : index
    %c0_1 = arith.constant 0 : index
    %c0_2 = arith.constant 0 : index
    %3 = vector.load %arg1[%c0, %c0_1, %c0_2] : memref<1x8x128xbf16, #tpu.memory_space<vmem>>, vector<1x8x128xbf16>
    %4 = vector.shape_cast %3 : vector<1x8x128xbf16> to vector<8x128xbf16>
    %c0_3 = arith.constant 0 : index
    %c0_4 = arith.constant 0 : index
    %c0_5 = arith.constant 0 : index
    %5 = vector.load %arg8[%c0_3, %c0_4, %c0_5] : memref<2x8x128xf32, #tpu.memory_space<vmem>>, vector<1x8x128xf32>
    %6 = vector.shape_cast %5 : vector<1x8x128xf32> to vector<8x128xf32>
    %c0_6 = arith.constant 0 : index
    %c0_7 = arith.constant 0 : index
    %c0_8 = arith.constant 0 : index
    %7 = vector.load %arg9[%c0_6, %c0_7, %c0_8] : memref<2x8x128xf32, #tpu.memory_space<vmem>>, vector<1x8x128xf32>
    %8 = vector.shape_cast %7 : vector<1x8x128xf32> to vector<8x128xf32>
    %c0_9 = arith.constant 0 : index
    %c0_10 = arith.constant 0 : index
    %9 = vector.load %arg4[%c0_9, %c0_10] : memref<256x512xbf16, #tpu.memory_space<vmem>>, vector<256x512xbf16>
    %10 = arith.truncf %6 : vector<8x128xf32> to vector<8x128xbf16>
    %11 = tpu.concatenate %4, %10 in 1 : vector<8x128xbf16>, vector<8x128xbf16> -> vector<8x256xbf16>
    %cst = arith.constant dense<0.000000e+00> : vector<8x512xf32>
    %12 = tpu.matmul %11, %9, %cst {dimension_numbers = #tpu.dot_dimension_numbers<[1], [0], [0], [1], [0, 0, 1, 1], [], []>} : vector<8x256xbf16>, vector<256x512xbf16>, vector<8x512xf32> -> vector<8x512xf32>
    %c0_11 = arith.constant 0 : index
    %c0_12 = arith.constant 0 : index
    %c0_13 = arith.constant 0 : index
    %13 = vector.load %arg6[%c0_11, %c0_12, %c0_13] : memref<2x1x512xf32, #tpu.memory_space<vmem>>, vector<1x1x512xf32>
    %14 = vector.shape_cast %13 : vector<1x1x512xf32> to vector<1x512xf32>
    %15 = vector.broadcast %14 : vector<1x512xf32> to vector<8x512xf32>
    %16 = arith.addf %12, %15 : vector<8x512xf32>
    %17 = vector.extract_strided_slice %16 {offsets = [0, 0], sizes = [8, 128], strides = [1, 1]} : vector<8x512xf32> to vector<8x128xf32>
    %18 = arith.negf %17 : vector<8x128xf32>
    %19 = math.exp %18 : vector<8x128xf32>
    %cst_14 = arith.constant 1.000000e+00 : f32
    %20 = vector.broadcast %cst_14 : f32 to vector<8x128xf32>
    %21 = arith.addf %20, %19 : vector<8x128xf32>
    %22 = arith.divf %20, %21 : vector<8x128xf32>
    %23 = vector.extract_strided_slice %16 {offsets = [0, 128], sizes = [8, 128], strides = [1, 1]} : vector<8x512xf32> to vector<8x128xf32>
    %24 = arith.negf %23 : vector<8x128xf32>
    %25 = math.exp %24 : vector<8x128xf32>
    %cst_15 = arith.constant 1.000000e+00 : f32
    %26 = vector.broadcast %cst_15 : f32 to vector<8x128xf32>
    %27 = arith.addf %26, %25 : vector<8x128xf32>
    %28 = arith.divf %26, %27 : vector<8x128xf32>
    %29 = vector.extract_strided_slice %16 {offsets = [0, 256], sizes = [8, 128], strides = [1, 1]} : vector<8x512xf32> to vector<8x128xf32>
    %30 = math.tanh %29 : vector<8x128xf32>
    %31 = vector.extract_strided_slice %16 {offsets = [0, 384], sizes = [8, 128], strides = [1, 1]} : vector<8x512xf32> to vector<8x128xf32>
    %32 = arith.negf %31 : vector<8x128xf32>
    %33 = math.exp %32 : vector<8x128xf32>
    %cst_16 = arith.constant 1.000000e+00 : f32
    %34 = vector.broadcast %cst_16 : f32 to vector<8x128xf32>
    %35 = arith.addf %34, %33 : vector<8x128xf32>
    %36 = arith.divf %34, %35 : vector<8x128xf32>
    %37 = arith.mulf %28, %8 : vector<8x128xf32>
    %38 = arith.mulf %22, %30 : vector<8x128xf32>
    %39 = arith.addf %37, %38 : vector<8x128xf32>
    %40 = math.tanh %39 : vector<8x128xf32>
    %41 = arith.mulf %36, %40 : vector<8x128xf32>
    %c0_17 = arith.constant 0 : index
    %c0_18 = arith.constant 0 : index
    %c0_19 = arith.constant 0 : index
    %42 = vector.load %arg8[%c0_17, %c0_18, %c0_19] : memref<2x8x128xf32, #tpu.memory_space<vmem>>, vector<1x8x128xf32>
    %43 = vector.shape_cast %42 : vector<1x8x128xf32> to vector<8x128xf32>
    %44 = vector.shape_cast %41 : vector<8x128xf32> to vector<1x8x128xf32>
    tpu.vector_store %arg8[%c0_17, %c0_18, %c0_19], %44 {strides = array<i32>} : memref<2x8x128xf32, #tpu.memory_space<vmem>>, vector<1x8x128xf32>,
    %c0_20 = arith.constant 0 : index
    %c0_21 = arith.constant 0 : index
    %c0_22 = arith.constant 0 : index
    %45 = vector.load %arg9[%c0_20, %c0_21, %c0_22] : memref<2x8x128xf32, #tpu.memory_space<vmem>>, vector<1x8x128xf32>
    %46 = vector.shape_cast %45 : vector<1x8x128xf32> to vector<8x128xf32>
    %47 = vector.shape_cast %39 : vector<8x128xf32> to vector<1x8x128xf32>
    tpu.vector_store %arg9[%c0_20, %c0_21, %c0_22], %47 {strides = array<i32>} : memref<2x8x128xf32, #tpu.memory_space<vmem>>, vector<1x8x128xf32>,
    %48 = arith.truncf %41 : vector<8x128xf32> to vector<8x128xbf16>
    %c1 = arith.constant 1 : index
    %c0_23 = arith.constant 0 : index
    %c0_24 = arith.constant 0 : index
    %49 = vector.load %arg8[%c1, %c0_23, %c0_24] : memref<2x8x128xf32, #tpu.memory_space<vmem>>, vector<1x8x128xf32>
    %50 = vector.shape_cast %49 : vector<1x8x128xf32> to vector<8x128xf32>
    %c1_25 = arith.constant 1 : index
    %c0_26 = arith.constant 0 : index
    %c0_27 = arith.constant 0 : index
    %51 = vector.load %arg9[%c1_25, %c0_26, %c0_27] : memref<2x8x128xf32, #tpu.memory_space<vmem>>, vector<1x8x128xf32>
    %52 = vector.shape_cast %51 : vector<1x8x128xf32> to vector<8x128xf32>
    %c0_28 = arith.constant 0 : index
    %c0_29 = arith.constant 0 : index
    %c0_30 = arith.constant 0 : index
    %53 = vector.load %arg5[%c0_28, %c0_29, %c0_30] : memref<1x256x512xbf16, #tpu.memory_space<vmem>>, vector<1x256x512xbf16>
    %54 = vector.shape_cast %53 : vector<1x256x512xbf16> to vector<256x512xbf16>
    %55 = arith.truncf %50 : vector<8x128xf32> to vector<8x128xbf16>
    %56 = tpu.concatenate %48, %55 in 1 : vector<8x128xbf16>, vector<8x128xbf16> -> vector<8x256xbf16>
    %cst_31 = arith.constant dense<0.000000e+00> : vector<8x512xf32>
    %57 = tpu.matmul %56, %54, %cst_31 {dimension_numbers = #tpu.dot_dimension_numbers<[1], [0], [0], [1], [0, 0, 1, 1], [], []>} : vector<8x256xbf16>, vector<256x512xbf16>, vector<8x512xf32> -> vector<8x512xf32>
    %c1_32 = arith.constant 1 : index
    %c0_33 = arith.constant 0 : index
    %c0_34 = arith.constant 0 : index
    %58 = vector.load %arg6[%c1_32, %c0_33, %c0_34] : memref<2x1x512xf32, #tpu.memory_space<vmem>>, vector<1x1x512xf32>
    %59 = vector.shape_cast %58 : vector<1x1x512xf32> to vector<1x512xf32>
    %60 = vector.broadcast %59 : vector<1x512xf32> to vector<8x512xf32>
    %61 = arith.addf %57, %60 : vector<8x512xf32>
    %62 = vector.extract_strided_slice %61 {offsets = [0, 0], sizes = [8, 128], strides = [1, 1]} : vector<8x512xf32> to vector<8x128xf32>
    %63 = arith.negf %62 : vector<8x128xf32>
    %64 = math.exp %63 : vector<8x128xf32>
    %cst_35 = arith.constant 1.000000e+00 : f32
    %65 = vector.broadcast %cst_35 : f32 to vector<8x128xf32>
    %66 = arith.addf %65, %64 : vector<8x128xf32>
    %67 = arith.divf %65, %66 : vector<8x128xf32>
    %68 = vector.extract_strided_slice %61 {offsets = [0, 128], sizes = [8, 128], strides = [1, 1]} : vector<8x512xf32> to vector<8x128xf32>
    %69 = arith.negf %68 : vector<8x128xf32>
    %70 = math.exp %69 : vector<8x128xf32>
    %cst_36 = arith.constant 1.000000e+00 : f32
    %71 = vector.broadcast %cst_36 : f32 to vector<8x128xf32>
    %72 = arith.addf %71, %70 : vector<8x128xf32>
    %73 = arith.divf %71, %72 : vector<8x128xf32>
    %74 = vector.extract_strided_slice %61 {offsets = [0, 256], sizes = [8, 128], strides = [1, 1]} : vector<8x512xf32> to vector<8x128xf32>
    %75 = math.tanh %74 : vector<8x128xf32>
    %76 = vector.extract_strided_slice %61 {offsets = [0, 384], sizes = [8, 128], strides = [1, 1]} : vector<8x512xf32> to vector<8x128xf32>
    %77 = arith.negf %76 : vector<8x128xf32>
    %78 = math.exp %77 : vector<8x128xf32>
    %cst_37 = arith.constant 1.000000e+00 : f32
    %79 = vector.broadcast %cst_37 : f32 to vector<8x128xf32>
    %80 = arith.addf %79, %78 : vector<8x128xf32>
    %81 = arith.divf %79, %80 : vector<8x128xf32>
    %82 = arith.mulf %73, %52 : vector<8x128xf32>
    %83 = arith.mulf %67, %75 : vector<8x128xf32>
    %84 = arith.addf %82, %83 : vector<8x128xf32>
    %85 = math.tanh %84 : vector<8x128xf32>
    %86 = arith.mulf %81, %85 : vector<8x128xf32>
    %c1_38 = arith.constant 1 : index
    %c0_39 = arith.constant 0 : index
    %c0_40 = arith.constant 0 : index
    %87 = vector.load %arg8[%c1_38, %c0_39, %c0_40] : memref<2x8x128xf32, #tpu.memory_space<vmem>>, vector<1x8x128xf32>
    %88 = vector.shape_cast %87 : vector<1x8x128xf32> to vector<8x128xf32>
    %89 = vector.shape_cast %86 : vector<8x128xf32> to vector<1x8x128xf32>
    tpu.vector_store %arg8[%c1_38, %c0_39, %c0_40], %89 {strides = array<i32>} : memref<2x8x128xf32, #tpu.memory_space<vmem>>, vector<1x8x128xf32>,
    %c1_41 = arith.constant 1 : index
    %c0_42 = arith.constant 0 : index
    %c0_43 = arith.constant 0 : index
    %90 = vector.load %arg9[%c1_41, %c0_42, %c0_43] : memref<2x8x128xf32, #tpu.memory_space<vmem>>, vector<1x8x128xf32>
    %91 = vector.shape_cast %90 : vector<1x8x128xf32> to vector<8x128xf32>
    %92 = vector.shape_cast %84 : vector<8x128xf32> to vector<1x8x128xf32>
    tpu.vector_store %arg9[%c1_41, %c0_42, %c0_43], %92 {strides = array<i32>} : memref<2x8x128xf32, #tpu.memory_space<vmem>>, vector<1x8x128xf32>,
    %93 = arith.truncf %86 : vector<8x128xf32> to vector<8x128xbf16>
    %c0_44 = arith.constant 0 : index
    %c0_45 = arith.constant 0 : index
    %c0_46 = arith.constant 0 : index
    %94 = vector.load %arg7[%c0_44, %c0_45, %c0_46] : memref<1x8x128xbf16, #tpu.memory_space<vmem>>, vector<1x8x128xbf16>
    %95 = vector.shape_cast %94 : vector<1x8x128xbf16> to vector<8x128xbf16>
    %96 = vector.shape_cast %93 : vector<8x128xbf16> to vector<1x8x128xbf16>
    tpu.vector_store %arg7[%c0_44, %c0_45, %c0_46], %96 {strides = array<i32>} : memref<1x8x128xbf16, #tpu.memory_space<vmem>>, vector<1x8x128xbf16>,
    return
  }
  func.func @transform_0(%arg0: i32) -> (i32, i32, i32) {
    %c0_i32 = arith.constant 0 : i32
    %c0_i32_0 = arith.constant 0 : i32
    %c0_i32_1 = arith.constant 0 : i32
    return %arg0, %c0_i32, %c0_i32_0 : i32, i32, i32
  }
  func.func @transform_1(%arg0: i32) -> (i32, i32, i32) {
    %c0_i32 = arith.constant 0 : i32
    %c0_i32_0 = arith.constant 0 : i32
    %c0_i32_1 = arith.constant 0 : i32
    %c0_i32_2 = arith.constant 0 : i32
    return %c0_i32, %c0_i32_0, %c0_i32_1 : i32, i32, i32
  }
  func.func @transform_2(%arg0: i32) -> (i32, i32, i32) {
    %c0_i32 = arith.constant 0 : i32
    %c0_i32_0 = arith.constant 0 : i32
    %c0_i32_1 = arith.constant 0 : i32
    %c0_i32_2 = arith.constant 0 : i32
    return %c0_i32, %c0_i32_0, %c0_i32_1 : i32, i32, i32
  }
  func.func @transform_3(%arg0: i32) -> (i32, i32) {
    %c0_i32 = arith.constant 0 : i32
    %c0_i32_0 = arith.constant 0 : i32
    %c0_i32_1 = arith.constant 0 : i32
    return %c0_i32, %c0_i32_0 : i32, i32
  }
  func.func @transform_4(%arg0: i32) -> (i32, i32, i32) {
    %c0_i32 = arith.constant 0 : i32
    %c0_i32_0 = arith.constant 0 : i32
    %c0_i32_1 = arith.constant 0 : i32
    %c0_i32_2 = arith.constant 0 : i32
    return %c0_i32, %c0_i32_0, %c0_i32_1 : i32, i32, i32
  }
  func.func @transform_5(%arg0: i32) -> (i32, i32, i32) {
    %c0_i32 = arith.constant 0 : i32
    %c0_i32_0 = arith.constant 0 : i32
    %c0_i32_1 = arith.constant 0 : i32
    %c0_i32_2 = arith.constant 0 : i32
    return %c0_i32, %c0_i32_0, %c0_i32_1 : i32, i32, i32
  }
  func.func @transform_6(%arg0: i32) -> (i32, i32, i32) {
    %c0_i32 = arith.constant 0 : i32
    %c0_i32_0 = arith.constant 0 : i32
    %c0_i32_1 = arith.constant 0 : i32
    return %arg0, %c0_i32, %c0_i32_0 : i32, i32, i32
  }
  func.func @transform_7(%arg0: i32) -> (i32, i32, i32) {
    %c0_i32 = arith.constant 0 : i32
    %c0_i32_0 = arith.constant 0 : i32
    %c0_i32_1 = arith.constant 0 : i32
    %c0_i32_2 = arith.constant 0 : i32
    return %c0_i32, %c0_i32_0, %c0_i32_1 : i32, i32, i32
  }
  func.func @transform_8(%arg0: i32) -> (i32, i32, i32) {
    %c0_i32 = arith.constant 0 : i32
    %c0_i32_0 = arith.constant 0 : i32
    %c0_i32_1 = arith.constant 0 : i32
    %c0_i32_2 = arith.constant 0 : i32
    return %c0_i32, %c0_i32_0, %c0_i32_1 : i32, i32, i32
  }
}

</mosaic_0001>

<bundles_post_ra>
// kernel: seq2seq_forward.3
= control target key start
LH: loop header
LB: loop body
LE: loop exit
PB: predicated region body
PF: predicated region fallthrough
CT: control target
= control target key end

     0   :  { %8 = vsyncpa [#allocation4], 0  ;;  %s1784_s0 = inlined_call_operand.vmem [shape: bf16[40,128], index: 0, kind: input, shape index: {}]   ;;  %s1785_s1 = inlined_call_operand.vmem [shape: bf16[128,2048], index: 1, kind: input, shape index: {}]   ;;  %s1786_s2 = inlined_call_operand.vmem [shape: f32[1,2048], index: 2, kind: input, shape index: {}]   ;;  %s1787_s3 = inlined_call_operand.hbm [shape: f32[40,2048], index: 3, kind: output, shape index: {}]  }
   0x1   :  { %10 = vsyncpa [#allocation4 + $0x1], 0  ;;  %s1375_s12 = smov 0   ;;  %s1377_s13 = smov 0  }
   0x2   :  { %s1379_s14 = smov 0   ;;  %s1381_s15 = smov 0  }
   0x3 LB: > { %s1396_s16 = sadd.s32 4294967295, %s1348_s15   ;;  %s1159_s17 = sadd.s32 4294967294, %s1348_s15   ;;  %s1348_s15 = sphi %s1381_s15, %s1793_s15   ;;  %s1344_s14 = sphi %s1379_s14, %s1792_s14   ;;  %s1340_s13 = sphi %s1377_s13, %s1791_s13   ;;  %s1336_s12 = sphi %s1375_s12, %s1790_s12  }
   0x4   : > { %s1400_s18 = sadd.s32 1, %s1348_s15   ;;  %s44_s19 = sadd.s32 1, %s1344_s14 }
   0x5   : > { %s41_s20 = ssub.s32 %s1348_s15, %s1400_s18  ;;  %p51_p0 = scmp.ne.s32.totalorder %s1344_s14, %s1340_s13 }
   0x6   : > { %p42_p1 = scmp.eq.s32.totalorder %s41_s20, 0  ;;  %p52_p2 = scmp.eq.s32.totalorder %s1348_s15, 0 }
   0x7   : > { %p107_p3 = scmp.eq.s32.totalorder %s1396_s16, 1  ;;  %p112_p4 = scmp.ne.s32.totalorder %s1340_s13, %s1336_s12 }
   0x8   : > { %s1412_s21 = scalar_select %p42_p1, %s1344_s14, %s44_s19  }
   0x9   : > { %p53_p5 = por %p52_p2, %p51_p0  ;;  %p1414_p6 = por %p107_p3, %p51_p0 }
   0xa   : > { %p113_p7 = scmp.eq.s32.totalorder %s1159_s17, 1  ;;  %p1161_p9 = scmp.ge.s32.totalorder %s1348_s15, 2 }
   0xc   : > { %p1418_p8 = por %p113_p7, %p112_p4  ;;  %132 = sbr.rel (%p1161_p9) target bundleno = 53 (0x35), region = 20 }
  0x11   : > { %135 = sbr.rel (!%p53_p5) target bundleno = 53 (0x35), region = 24  ;;  %s137_s24 = sand.u32 (%p53_p5), 1, %s1344_s14  }
  0x12   : > { %s1239_s25 = sshll.u32 (%p53_p5), %s1348_s15, 5  ;;  %s1162_s26 = sshll.u32 (%p53_p5), %s137_s24, 9 }
  0x13   : > { %s1430_s29 = scalar_lea.vmem (%p53_p5), %s1785_s1, %s1239_s25  ;;  %s1435_s30 = scalar_lea.vmem (%p53_p5), [#allocation2], %s1162_s26 }
  0x14   : > { %v155_v0 = vld [vmem:[%s1430_s29] sm:$0xff] (%p53_p5)  ;;  %v157_v1 = vld [vmem:[%s1430_s29 + $0x8] sm:$0xff] (%p53_p5)  ;;  %v159_v2 = vld [vmem:[%s1430_s29 + $0x10] sm:$0xff] (%p53_p5) }
  0x15   : > { %156 = vst [vmem:[%s1435_s30] sm:$0xff] (%p53_p5), %v155_v0  ;;  %158 = vst [vmem:[%s1435_s30 + $0x8] sm:$0xff] (%p53_p5), %v157_v1  ;;  %v161_v3 = vld [vmem:[%s1430_s29 + $0x18] sm:$0xff] (%p53_p5)  ;;  %v163_v4 = vld [vmem:[%s1430_s29 + $0x40] sm:$0xff] (%p53_p5) }
  0x16   : > { %160 = vst [vmem:[%s1435_s30 + $0x10] sm:$0xff] %v159_v2  ;;  %v165_v5 = vld [vmem:[%s1430_s29 + $0x48] sm:$0xff]  ;;  %162 = vst [vmem:[%s1435_s30 + $0x18] sm:$0xff] %v161_v3  ;;  %v167_v6 = vld [vmem:[%s1430_s29 + $0x50] sm:$0xff] }
  0x17   : > { %164 = vst [vmem:[%s1435_s30 + $0x20] sm:$0xff] %v163_v4  ;;  %166 = vst [vmem:[%s1435_s30 + $0x28] sm:$0xff] %v165_v5  ;;  %v169_v7 = vld [vmem:[%s1430_s29 + $0x58] sm:$0xff]  ;;  %v171_v8 = vld [vmem:[%s1430_s29 + $0x80] sm:$0xff] }
  0x18   : > { %168 = vst [vmem:[%s1435_s30 + $0x30] sm:$0xff] %v167_v6  ;;  %170 = vst [vmem:[%s1435_s30 + $0x38] sm:$0xff] %v169_v7  ;;  %v173_v9 = vld [vmem:[%s1430_s29 + $0x88] sm:$0xff]  ;;  %v175_v10 = vld [vmem:[%s1430_s29 + $0x90] sm:$0xff] }
  0x19   : > { %172 = vst [vmem:[%s1435_s30 + $0x40] sm:$0xff] %v171_v8  ;;  %v177_v11 = vld [vmem:[%s1430_s29 + $0x98] sm:$0xff]  ;;  %174 = vst [vmem:[%s1435_s30 + $0x48] sm:$0xff] %v173_v9  ;;  %v179_v12 = vld [vmem:[%s1430_s29 + $0xc0] sm:$0xff] }
  0x1a   : > { %176 = vst [vmem:[%s1435_s30 + $0x50] sm:$0xff] %v175_v10  ;;  %178 = vst [vmem:[%s1435_s30 + $0x58] sm:$0xff] %v177_v11  ;;  %v181_v13 = vld [vmem:[%s1430_s29 + $0xc8] sm:$0xff]  ;;  %v183_v14 = vld [vmem:[%s1430_s29 + $0xd0] sm:$0xff] }
  0x1b   : > { %180 = vst [vmem:[%s1435_s30 + $0x60] sm:$0xff] %v179_v12  ;;  %182 = vst [vmem:[%s1435_s30 + $0x68] sm:$0xff] %v181_v13  ;;  %v185_v15 = vld [vmem:[%s1430_s29 + $0xd8] sm:$0xff]  ;;  %v187_v16 = vld [vmem:[%s1430_s29 + $0x100] sm:$0xff] }
  0x1c   : > { %184 = vst [vmem:[%s1435_s30 + $0x70] sm:$0xff] %v183_v14  ;;  %v189_v17 = vld [vmem:[%s1430_s29 + $0x108] sm:$0xff]  ;;  %186 = vst [vmem:[%s1435_s30 + $0x78] sm:$0xff] %v185_v15  ;;  %v191_v18 = vld [vmem:[%s1430_s29 + $0x110] sm:$0xff] }
  0x1d   : > { %188 = vst [vmem:[%s1435_s30 + $0x80] sm:$0xff] %v187_v16  ;;  %190 = vst [vmem:[%s1435_s30 + $0x88] sm:$0xff] %v189_v17  ;;  %v193_v19 = vld [vmem:[%s1430_s29 + $0x118] sm:$0xff]  ;;  %v195_v20 = vld [vmem:[%s1430_s29 + $0x140] sm:$0xff] }
  0x1e   : > { %192 = vst [vmem:[%s1435_s30 + $0x90] sm:$0xff] %v191_v18  ;;  %194 = vst [vmem:[%s1435_s30 + $0x98] sm:$0xff] %v193_v19  ;;  %v197_v21 = vld [vmem:[%s1430_s29 + $0x148] sm:$0xff]  ;;  %v199_v22 = vld [vmem:[%s1430_s29 + $0x150] sm:$0xff] }
  0x1f   : > { %196 = vst [vmem:[%s1435_s30 + $0xa0] sm:$0xff] %v195_v20  ;;  %v201_v23 = vld [vmem:[%s1430_s29 + $0x158] sm:$0xff]  ;;  %198 = vst [vmem:[%s1435_s30 + $0xa8] sm:$0xff] %v197_v21  ;;  %v203_v24 = vld [vmem:[%s1430_s29 + $0x180] sm:$0xff] }
  0x20   : > { %200 = vst [vmem:[%s1435_s30 + $0xb0] sm:$0xff] %v199_v22  ;;  %202 = vst [vmem:[%s1435_s30 + $0xb8] sm:$0xff] %v201_v23  ;;  %v205_v25 = vld [vmem:[%s1430_s29 + $0x188] sm:$0xff]  ;;  %v207_v26 = vld [vmem:[%s1430_s29 + $0x190] sm:$0xff] }
  0x21   : > { %204 = vst [vmem:[%s1435_s30 + $0xc0] sm:$0xff] %v203_v24  ;;  %206 = vst [vmem:[%s1435_s30 + $0xc8] sm:$0xff] %v205_v25  ;;  %v209_v27 = vld [vmem:[%s1430_s29 + $0x198] sm:$0xff]  ;;  %v211_v28 = vld [vmem:[%s1430_s29 + $0x1c0] sm:$0xff] }
  0x22   : > { %208 = vst [vmem:[%s1435_s30 + $0xd0] sm:$0xff] %v207_v26  ;;  %v213_v29 = vld [vmem:[%s1430_s29 + $0x1c8] sm:$0xff]  ;;  %210 = vst [vmem:[%s1435_s30 + $0xd8] sm:$0xff] %v209_v27  ;;  %v215_v30 = vld [vmem:[%s1430_s29 + $0x1d0] sm:$0xff] }
  0x23   : > { %212 = vst [vmem:[%s1435_s30 + $0xe0] sm:$0xff] %v211_v28  ;;  %214 = vst [vmem:[%s1435_s30 + $0xe8] sm:$0xff] %v213_v29  ;;  %v217_v31 = vld [vmem:[%s1430_s29 + $0x1d8] sm:$0xff]  ;;  %v219_v32 = vld [vmem:[%s1430_s29 + $0x200] sm:$0xff] }
  0x24   : > { %216 = vst [vmem:[%s1435_s30 + $0xf0] sm:$0xff] %v215_v30  ;;  %218 = vst [vmem:[%s1435_s30 + $0xf8] sm:$0xff] %v217_v31  ;;  %v221_v33 = vld [vmem:[%s1430_s29 + $0x208] sm:$0xff]  ;;  %v223_v34 = vld [vmem:[%s1430_s29 + $0x210] sm:$0xff] }
  0x25   : > { %220 = vst [vmem:[%s1435_s30 + $0x100] sm:$0xff] %v219_v32  ;;  %v225_v35 = vld [vmem:[%s1430_s29 + $0x218] sm:$0xff]  ;;  %222 = vst [vmem:[%s1435_s30 + $0x108] sm:$0xff] %v221_v33  ;;  %v227_v36 = vld [vmem:[%s1430_s29 + $0x240] sm:$0xff] }
  0x26   : > { %224 = vst [vmem:[%s1435_s30 + $0x110] sm:$0xff] %v223_v34  ;;  %226 = vst [vmem:[%s1435_s30 + $0x118] sm:$0xff] %v225_v35  ;;  %v229_v37 = vld [vmem:[%s1430_s29 + $0x248] sm:$0xff]  ;;  %v231_v38 = vld [vmem:[%s1430_s29 + $0x250] sm:$0xff] }
  0x27   : > { %228 = vst [vmem:[%s1435_s30 + $0x120] sm:$0xff] %v227_v36  ;;  %230 = vst [vmem:[%s1435_s30 + $0x128] sm:$0xff] %v229_v37  ;;  %v233_v39 = vld [vmem:[%s1430_s29 + $0x258] sm:$0xff]  ;;  %v235_v40 = vld [vmem:[%s1430_s29 + $0x280] sm:$0xff] }
  0x28   : > { %232 = vst [vmem:[%s1435_s30 + $0x130] sm:$0xff] %v231_v38  ;;  %v237_v41 = vld [vmem:[%s1430_s29 + $0x288] sm:$0xff]  ;;  %234 = vst [vmem:[%s1435_s30 + $0x138] sm:$0xff] %v233_v39  ;;  %v239_v42 = vld [vmem:[%s1430_s29 + $0x290] sm:$0xff] }
  0x29   : > { %236 = vst [vmem:[%s1435_s30 + $0x140] sm:$0xff] %v235_v40  ;;  %238 = vst [vmem:[%s1435_s30 + $0x148] sm:$0xff] %v237_v41  ;;  %v241_v43 = vld [vmem:[%s1430_s29 + $0x298] sm:$0xff]  ;;  %v243_v44 = vld [vmem:[%s1430_s29 + $0x2c0] sm:$0xff] }
  0x2a   : > { %240 = vst [vmem:[%s1435_s30 + $0x150] sm:$0xff] %v239_v42  ;;  %242 = vst [vmem:[%s1435_s30 + $0x158] sm:$0xff] %v241_v43  ;;  %v245_v45 = vld [vmem:[%s1430_s29 + $0x2c8] sm:$0xff]  ;;  %v247_v46 = vld [vmem:[%s1430_s29 + $0x2d0] sm:$0xff] }
  0x2b   : > { %244 = vst [vmem:[%s1435_s30 + $0x160] sm:$0xff] %v243_v44  ;;  %v249_v47 = vld [vmem:[%s1430_s29 + $0x2d8] sm:$0xff]  ;;  %246 = vst [vmem:[%s1435_s30 + $0x168] sm:$0xff] %v245_v45  ;;  %v251_v48 = vld [vmem:[%s1430_s29 + $0x300] sm:$0xff] }
  0x2c   : > { %248 = vst [vmem:[%s1435_s30 + $0x170] sm:$0xff] %v247_v46  ;;  %250 = vst [vmem:[%s1435_s30 + $0x178] sm:$0xff] %v249_v47  ;;  %v253_v49 = vld [vmem:[%s1430_s29 + $0x308] sm:$0xff]  ;;  %v255_v50 = vld [vmem:[%s1430_s29 + $0x310] sm:$0xff] }
  0x2d   : > { %252 = vst [vmem:[%s1435_s30 + $0x180] sm:$0xff] %v251_v48  ;;  %254 = vst [vmem:[%s1435_s30 + $0x188] sm:$0xff] %v253_v49  ;;  %v257_v51 = vld [vmem:[%s1430_s29 + $0x318] sm:$0xff]  ;;  %v259_v52 = vld [vmem:[%s1430_s29 + $0x340] sm:$0xff] }
  0x2e   : > { %256 = vst [vmem:[%s1435_s30 + $0x190] sm:$0xff] %v255_v50  ;;  %v261_v53 = vld [vmem:[%s1430_s29 + $0x348] sm:$0xff]  ;;  %258 = vst [vmem:[%s1435_s30 + $0x198] sm:$0xff] %v257_v51  ;;  %v263_v54 = vld [vmem:[%s1430_s29 + $0x350] sm:$0xff] }
  0x2f   : > { %260 = vst [vmem:[%s1435_s30 + $0x1a0] sm:$0xff] %v259_v52  ;;  %262 = vst [vmem:[%s1435_s30 + $0x1a8] sm:$0xff] %v261_v53  ;;  %v265_v55 = vld [vmem:[%s1430_s29 + $0x358] sm:$0xff]  ;;  %v267_v56 = vld [vmem:[%s1430_s29 + $0x380] sm:$0xff] }
  0x30   : > { %264 = vst [vmem:[%s1435_s30 + $0x1b0] sm:$0xff] %v263_v54  ;;  %266 = vst [vmem:[%s1435_s30 + $0x1b8] sm:$0xff] %v265_v55  ;;  %v269_v57 = vld [vmem:[%s1430_s29 + $0x388] sm:$0xff]  ;;  %v271_v58 = vld [vmem:[%s1430_s29 + $0x390] sm:$0xff] }
  0x31   : > { %268 = vst [vmem:[%s1435_s30 + $0x1c0] sm:$0xff] %v267_v56  ;;  %v273_v59 = vld [vmem:[%s1430_s29 + $0x398] sm:$0xff]  ;;  %270 = vst [vmem:[%s1435_s30 + $0x1c8] sm:$0xff] %v269_v57  ;;  %v275_v60 = vld [vmem:[%s1430_s29 + $0x3c0] sm:$0xff] }
  0x32   : > { %272 = vst [vmem:[%s1435_s30 + $0x1d0] sm:$0xff] %v271_v58  ;;  %274 = vst [vmem:[%s1435_s30 + $0x1d8] sm:$0xff] %v273_v59  ;;  %v277_v61 = vld [vmem:[%s1430_s29 + $0x3c8] sm:$0xff]  ;;  %v279_v62 = vld [vmem:[%s1430_s29 + $0x3d0] sm:$0xff] }
  0x33   : > { %276 = vst [vmem:[%s1435_s30 + $0x1e0] sm:$0xff] %v275_v60  ;;  %278 = vst [vmem:[%s1435_s30 + $0x1e8] sm:$0xff] %v277_v61  ;;  %v281_v63 = vld [vmem:[%s1430_s29 + $0x3d8] sm:$0xff] }
  0x34   : > { %280 = vst [vmem:[%s1435_s30 + $0x1f0] sm:$0xff] %v279_v62  ;;  %282 = vst [vmem:[%s1435_s30 + $0x1f8] sm:$0xff] %v281_v63 }
  0x35 PF: > { %p1165_p10 = scmp.ge.s32.totalorder %s1348_s15, 1  ;;  %p295_p11 = scmp.lt.s32.totalorder %s1348_s15, 3 }
  0x37   : > { %p296_p12 = pnand %p1165_p10, %p295_p11 }
  0x38   : > { %s1565_s4 = sand.u32 (!%p296_p12), 1, %s1340_s13   ;;  %s1167_s19 = sshll.u32 (!%p296_p12), %s1396_s16, 3 }
  0x39   : > { %299 = sbr.rel (%p296_p12) target bundleno = 359 (0x167), region = 51  ;;  %s1166_s5 = sshll.u32 (!%p296_p12), %s1565_s4, 9 }
  0x3a   : > { %s1570_s6 = scalar_lea.vmem (!%p296_p12), [#allocation2], %s1166_s5  ;;  %p331_p13 = scmp.lt.s32.totalorder (!%p296_p12), %s1167_s19, 15 }
  0x3b   : > { %s1241_s26 = smul.u32 (!%p296_p12), 320, %s1565_s4  ;;  %s1240_s28 = sshll.u32 (!%p296_p12), %s1396_s16, 10 }
  0x3c   : > { %s1069_s16 = scalar_lea.sflag (!%p296_p12), [#allocation4], %s1565_s4  ;;  %s1351_s8 = smov (!%p296_p12), [#allocation3]  }
  0x3d   : > { %s1684_s27 = scalar_lea.vmem (!%p296_p12), [#allocation3], %s1241_s26  ;;  %s1292_s9 = sshll.u32 (!%p296_p12), %s1351_s8, 4  ;;  %s1293_s9 = int_to_ptr.vmem [resolvable:$false] %s1292_s9 }
  0x3e   : > { %v1350_v0 = vmov 0   ;;  %v398_v1 = vld [vmem:[%s1570_s6 + $0x1c0] sm:$0xff]  ;;  %v399_v3 = vld [vmem:[%s1570_s6 + $0x1c8] sm:$0xff]  ;;  %v400_v63 = vld [vmem:[%s1570_s6 + $0x1d0] sm:$0xff]  ;;  %s1795_s19 = smov (!%p331_p13, %s1167_s19), 15  ;;  %s1082_s29 = sshll.u32 %s1684_s27, 4  ;;  %s1738_s29 = int_to_ptr.vmem [resolvable:$true] %s1082_s29 }
  0x3f   : > { %816 = vmatprep.mubr.bf16.mxu0 %v1350_v0  ;;  %877 = vmatprep.mubr.bf16.mxu1 %v1350_v0  ;;  %v402_v2 = vld [vmem:[%s1570_s6 + $0x1e0] sm:$0xff]  ;;  %v403_v5 = vld [vmem:[%s1570_s6 + $0x1e8] sm:$0xff]  ;;  %s333_s25 = scalar_lea.vmem %s1786_s2, %s1795_s19  ;;  %s1288_s7 = scalar_lea.vmem %s1738_s29, 5120 }
  0x40   : > { %v1228_v4 = vcombine.high %v398_v1, %v402_v2  ;;  %v1227_v6 = vcombine.low %v398_v1, %v402_v2  ;;  %v390_v7 = vld [vmem:[%s1570_s6 + $0x180] sm:$0xff]  ;;  %v1230_v9 = vcombine.high %v399_v3, %v403_v5  ;;  %v1229_v10 = vcombine.low %v399_v3, %v403_v5  ;;  %v391_v12 = vld [vmem:[%s1570_s6 + $0x188] sm:$0xff]  ;;  %v404_v1 = vld [vmem:[%s1570_s6 + $0x1f0] sm:$0xff]  ;;  %p1289_p0 = scmp.ne.s32.totalorder %s1738_s29, %s1288_s7  ;;  %s1294_s10 = scalar_lea.vmem %s1293_s9, 10240 }
  0x41   : > { %v394_v8 = vld [vmem:[%s1570_s6 + $0x1a0] sm:$0xff]  ;;  %v395_v13 = vld [vmem:[%s1570_s6 + $0x1a8] sm:$0xff]  ;;  %v401_v2 = vld [vmem:[%s1570_s6 + $0x1d8] sm:$0xff]  ;;  %p1295_p3 = scmp.lt.s32.totalorder %s1738_s29, %s1293_s9  ;;  %p1296_p4 = scmp.lt.s32.totalorder %s1294_s10, %s1288_s7 }
  0x42   : > { %v1220_v11 = vcombine.high %v390_v7, %v394_v8  ;;  %v382_v14 = vld [vmem:[%s1570_s6 + $0x140] sm:$0xff]  ;;  %784 = vmatprep.subr.bf16.mxu0 %v1228_v4  ;;  %v1222_v15 = vcombine.high %v391_v12, %v395_v13  ;;  %v383_v17 = vld [vmem:[%s1570_s6 + $0x148] sm:$0xff]  ;;  %845 = vmatprep.subr.bf16.mxu1 %v1230_v9  ;;  %v1219_v19 = vcombine.low %v390_v7, %v394_v8  ;;  %v405_v3 = vld [vmem:[%s1570_s6 + $0x1f8] sm:$0xff]  ;;  %p1290_p1 = pnand %p1289_p0, %p1414_p6 }
  0x43   : > { %v386_v16 = vld [vmem:[%s1570_s6 + $0x160] sm:$0xff]  ;;  %v387_v18 = vld [vmem:[%s1570_s6 + $0x168] sm:$0xff]  ;;  %785 = vmatpush1.bf16.msra.mxu0 %v1227_v6  ;;  %846 = vmatpush1.bf16.msra.mxu1 %v1229_v10  ;;  %v1221_v20 = vcombine.low %v391_v12, %v395_v13  ;;  %v1232_v6 = vcombine.high %v400_v63, %v404_v1  ;;  %v1234_v7 = vcombine.high %v401_v2, %v405_v3  ;;  %v392_v8 = vld [vmem:[%s1570_s6 + $0x190] sm:$0xff]  ;;  %p1297_p5 = por %p1296_p4, %p1295_p3 }
  0x44   : > { %786 = vmatprep.subr.bf16.mxu0 %v1220_v11  ;;  %v1212_v21 = vcombine.high %v382_v14, %v386_v16  ;;  %847 = vmatprep.subr.bf16.mxu1 %v1222_v15  ;;  %v1214_v22 = vcombine.high %v383_v17, %v387_v18  ;;  %v374_v23 = vld [vmem:[%s1570_s6 + $0x100] sm:$0xff]  ;;  %v375_v25 = vld [vmem:[%s1570_s6 + $0x108] sm:$0xff]  ;;  %v1211_v27 = vcombine.low %v382_v14, %v386_v16  ;;  %v396_v9 = vld [vmem:[%s1570_s6 + $0x1b0] sm:$0xff]  ;;  %p1291_p2 = pneg %p1290_p1 }
  0x45   : > { %v378_v24 = vld [vmem:[%s1570_s6 + $0x120] sm:$0xff]  ;;  %v379_v26 = vld [vmem:[%s1570_s6 + $0x128] sm:$0xff]  ;;  %v1213_v28 = vcombine.low %v383_v17, %v387_v18  ;;  %v393_v11 = vld [vmem:[%s1570_s6 + $0x198] sm:$0xff]  ;;  %v1231_v13 = vcombine.low %v400_v63, %v404_v1  ;;  %v1233_v14 = vcombine.low %v401_v2, %v405_v3  ;;  %v1224_v15 = vcombine.high %v392_v8, %v396_v9 }
  0x46   : > { %v1204_v29 = vcombine.high %v374_v23, %v378_v24  ;;  %v1206_v30 = vcombine.high %v375_v25, %v379_v26  ;;  %v366_v31 = vld [vmem:[%s1570_s6 + $0xc0] sm:$0xff]  ;;  %v367_v33 = vld [vmem:[%s1570_s6 + $0xc8] sm:$0xff]  ;;  %v1203_v35 = vcombine.low %v374_v23, %v378_v24  ;;  %v1205_v36 = vcombine.low %v375_v25, %v379_v26  ;;  %v397_v12 = vld [vmem:[%s1570_s6 + $0x1b8] sm:$0xff]  ;;  %p1298_p7 = pnand %p1297_p5, %p1291_p2 }
  0x47   : > { %787 = vmatpush1.bf16.msra.mxu0 %v1219_v19  ;;  %848 = vmatpush1.bf16.msra.mxu1 %v1221_v20  ;;  %v370_v32 = vld [vmem:[%s1570_s6 + $0xe0] sm:$0xff]  ;;  %v371_v34 = vld [vmem:[%s1570_s6 + $0xe8] sm:$0xff]  ;;  %v1226_v16 = vcombine.high %v393_v11, %v397_v12  ;;  %v384_v17 = vld [vmem:[%s1570_s6 + $0x150] sm:$0xff] }
  0x48   : > { %788 = vmatprep.subr.bf16.mxu0 %v1212_v21  ;;  %849 = vmatprep.subr.bf16.mxu1 %v1214_v22  ;;  %v1196_v37 = vcombine.high %v366_v31, %v370_v32  ;;  %v1198_v38 = vcombine.high %v367_v33, %v371_v34  ;;  %v358_v39 = vld [vmem:[%s1570_s6 + $0x80] sm:$0xff]  ;;  %v359_v41 = vld [vmem:[%s1570_s6 + $0x88] sm:$0xff]  ;;  %v1195_v43 = vcombine.low %v366_v31, %v370_v32  ;;  %v388_v18 = vld [vmem:[%s1570_s6 + $0x170] sm:$0xff] }
  0x49   : > { %v362_v40 = vld [vmem:[%s1570_s6 + $0xa0] sm:$0xff]  ;;  %v363_v42 = vld [vmem:[%s1570_s6 + $0xa8] sm:$0xff]  ;;  %v1197_v44 = vcombine.low %v367_v33, %v371_v34  ;;  %v385_v19 = vld [vmem:[%s1570_s6 + $0x158] sm:$0xff]  ;;  %v1223_v21 = vcombine.low %v392_v8, %v396_v9  ;;  %v1225_v22 = vcombine.low %v393_v11, %v397_v12  ;;  %v1216_v23 = vcombine.high %v384_v17, %v388_v18 }
  0x4a   : > { %v1188_v45 = vcombine.high %v358_v39, %v362_v40  ;;  %v1190_v46 = vcombine.high %v359_v41, %v363_v42  ;;  %v350_v47 = vld [vmem:[%s1570_s6 + $0x40] sm:$0xff]  ;;  %v351_v49 = vld [vmem:[%s1570_s6 + $0x48] sm:$0xff]  ;;  %v1187_v51 = vcombine.low %v358_v39, %v362_v40  ;;  %v1189_v52 = vcombine.low %v359_v41, %v363_v42  ;;  %v389_v20 = vld [vmem:[%s1570_s6 + $0x178] sm:$0xff] }
  0x4b   : > { %789 = vmatpush1.bf16.msra.mxu0 %v1211_v27  ;;  %850 = vmatpush1.bf16.msra.mxu1 %v1213_v28  ;;  %v354_v48 = vld [vmem:[%s1570_s6 + $0x60] sm:$0xff]  ;;  %v355_v50 = vld [vmem:[%s1570_s6 + $0x68] sm:$0xff]  ;;  %v1218_v24 = vcombine.high %v385_v19, %v389_v20  ;;  %v376_v25 = vld [vmem:[%s1570_s6 + $0x110] sm:$0xff]  ;;  %v1217_v31 = vcombine.low %v385_v19, %v389_v20 }
  0x4c   : > { %790 = vmatprep.subr.bf16.mxu0 %v1204_v29  ;;  %851 = vmatprep.subr.bf16.mxu1 %v1206_v30  ;;  %v1180_v53 = vcombine.high %v350_v47, %v354_v48  ;;  %v1182_v54 = vcombine.high %v351_v49, %v355_v50  ;;  %v342_v55 = vld [vmem:[%s1570_s6] sm:$0xff]  ;;  %v343_v57 = vld [vmem:[%s1570_s6 + $0x8] sm:$0xff]  ;;  %v1179_v59 = vcombine.low %v350_v47, %v354_v48  ;;  %v380_v26 = vld [vmem:[%s1570_s6 + $0x130] sm:$0xff] }
  0x4d   : > { %v346_v56 = vld [vmem:[%s1570_s6 + $0x20] sm:$0xff]  ;;  %v347_v58 = vld [vmem:[%s1570_s6 + $0x28] sm:$0xff]  ;;  %v1181_v60 = vcombine.low %v351_v49, %v355_v50  ;;  %v377_v28 = vld [vmem:[%s1570_s6 + $0x118] sm:$0xff]  ;;  %v1215_v30 = vcombine.low %v384_v17, %v388_v18  ;;  %v1208_v32 = vcombine.high %v376_v25, %v380_v26 }
  0x4e   : > { %v1172_v61 = vcombine.high %v342_v55, %v346_v56  ;;  %v1174_v62 = vcombine.high %v343_v57, %v347_v58  ;;  %v1171_v4 = vcombine.low %v342_v55, %v346_v56  ;;  %v1173_v5 = vcombine.low %v343_v57, %v347_v58  ;;  %v1613_v10 = vld [vmem:[%s1784_s0] sm:$0xff]   ;;  %v1630_v27 = vld [vmem:[%s1784_s0 + $0x8] sm:$0xff]   ;;  %v381_v29 = vld [vmem:[%s1570_s6 + $0x138] sm:$0xff] }
  0x4f   : > { %791 = vmatpush1.bf16.msra.mxu0 %v1203_v35  ;;  %852 = vmatpush1.bf16.msra.mxu1 %v1205_v36  ;;  %v1210_v33 = vcombine.high %v377_v28, %v381_v29  ;;  %v368_v34 = vld [vmem:[%s1570_s6 + $0xd0] sm:$0xff]  ;;  %v369_v36 = vld [vmem:[%s1570_s6 + $0xd8] sm:$0xff]  ;;  %v1209_v39 = vcombine.low %v377_v28, %v381_v29  ;;  %v1674_v9 = vld [vmem:[%s333_s25] sm:$0xff] }
  0x50   : > { %792 = vmatprep.subr.bf16.mxu0 %v1196_v37  ;;  %853 = vmatprep.subr.bf16.mxu1 %v1198_v38  ;;  %v372_v35 = vld [vmem:[%s1570_s6 + $0xf0] sm:$0xff]  ;;  %v373_v37 = vld [vmem:[%s1570_s6 + $0xf8] sm:$0xff]  ;;  %v1207_v38 = vcombine.low %v376_v25, %v380_v26 }
  0x51   : > { %v1200_v40 = vcombine.high %v368_v34, %v372_v35  ;;  %v1202_v41 = vcombine.high %v369_v36, %v373_v37  ;;  %v360_v42 = vld [vmem:[%s1570_s6 + $0x90] sm:$0xff]  ;;  %v1199_v47 = vcombine.low %v368_v34, %v372_v35  ;;  %v1201_v48 = vcombine.low %v369_v36, %v373_v37 }
  0x53   : > { %793 = vmatpush1.bf16.msra.mxu0 %v1195_v43  ;;  %854 = vmatpush1.bf16.msra.mxu1 %v1197_v44  ;;  %v364_v43 = vld [vmem:[%s1570_s6 + $0xb0] sm:$0xff] }
  0x54   : > { %794 = vmatprep.subr.bf16.mxu0 %v1188_v45  ;;  %855 = vmatprep.subr.bf16.mxu1 %v1190_v46  ;;  %v1287_v44 = vld [vmem:[%s1784_s0 + $0x10] ss:$0 sps:$4 sm:$0xff]   ;;  %v361_v45 = vld [vmem:[%s1570_s6 + $0x98] sm:$0xff]  ;;  %v1192_v49 = vcombine.high %v360_v42, %v364_v43  ;;  %v1191_v55 = vcombine.low %v360_v42, %v364_v43 }
  0x55   : > { %v365_v46 = vld [vmem:[%s1570_s6 + $0xb8] sm:$0xff] }
  0x56   : > { %v1194_v50 = vcombine.high %v361_v45, %v365_v46  ;;  %v1193_v56 = vcombine.low %v361_v45, %v365_v46 }
  0x57   : > { %795 = vmatpush1.bf16.msra.mxu0 %v1187_v51  ;;  %856 = vmatpush1.bf16.msra.mxu1 %v1189_v52  ;;  %v352_v51 = vld [vmem:[%s1570_s6 + $0x50] sm:$0xff] }
  0x58   : > { %796 = vmatprep.subr.bf16.mxu0 %v1180_v53  ;;  %857 = vmatprep.subr.bf16.mxu1 %v1182_v54  ;;  %v356_v52 = vld [vmem:[%s1570_s6 + $0x70] sm:$0xff]  ;;  %v353_v53 = vld [vmem:[%s1570_s6 + $0x58] sm:$0xff] }
  0x59   : > { %v357_v54 = vld [vmem:[%s1570_s6 + $0x78] sm:$0xff]  ;;  %v1184_v57 = vcombine.high %v352_v51, %v356_v52  ;;  %v1183_v63 = vcombine.low %v352_v51, %v356_v52 }
  0x5a   : > { %v1186_v58 = vcombine.high %v353_v53, %v357_v54  ;;  %v1185_v1 = vcombine.low %v353_v53, %v357_v54 }
  0x5b   : > { %797 = vmatpush1.bf16.msra.mxu0 %v1179_v59  ;;  %858 = vmatpush1.bf16.msra.mxu1 %v1181_v60  ;;  %v344_v59 = vld [vmem:[%s1570_s6 + $0x10] sm:$0xff] }
  0x5c   : > { %798 = vmatprep.subr.bf16.mxu0 %v1172_v61  ;;  %859 = vmatprep.subr.bf16.mxu1 %v1174_v62  ;;  %v348_v60 = vld [vmem:[%s1570_s6 + $0x30] sm:$0xff]  ;;  %v345_v61 = vld [vmem:[%s1570_s6 + $0x18] sm:$0xff] }
  0x5d   : > { %v349_v62 = vld [vmem:[%s1570_s6 + $0x38] sm:$0xff]  ;;  %v1176_v2 = vcombine.high %v344_v59, %v348_v60  ;;  %s1735_s6 = scalar_lea.hbm %s1787_s3, %s1240_s28 }
  0x5e   : > { %v1178_v3 = vcombine.high %v345_v61, %v349_v62 }
  0x5f   : > { %799 = vmatpush1.bf16.msra.mxu0 %v1171_v4  ;;  %860 = vmatpush1.bf16.msra.mxu1 %v1173_v5  ;;  %v1175_v4 = vcombine.low %v344_v59, %v348_v60  ;;  %v1177_v5 = vcombine.low %v345_v61, %v349_v62 }
  0x60   : > { %906 = vmatprep.subr.bf16.mxu0 %v1232_v6  ;;  %967 = vmatprep.subr.bf16.mxu1 %v1234_v7  ;;  %v408_v6 = vlaneseq }
  0x62   : > { %817 = vmatmul.mubr.bf16.vlgmr.msra.gmra.mxu0 %v1613_v10  ;;  %878 = vmatmul.mubr.bf16.vlgmr.msra.gmra.mxu1 %v1613_v10  ;;  %v1668_v7 = vshrl.u32 %v408_v6, 7 }
  0x63   : > { %907 = vmatpush1.bf16.msra.mxu0 %v1231_v13  ;;  %968 = vmatpush1.bf16.msra.mxu1 %v1233_v14 }
  0x64   : > { %908 = vmatprep.subr.bf16.mxu0 %v1224_v15  ;;  %969 = vmatprep.subr.bf16.mxu1 %v1226_v16  ;;  %v410_v8 = vsub.s32 0, %v1668_v7  ;;  %v422_v11 = vsub.s32 3, %v1668_v7  ;;  %v426_v60 = vsub.s32 4, %v1668_v7  ;;  %v434_v61 = vsub.s32 6, %v1668_v7 }
  0x65   : > { %826 = vmatprep.mubr.bf16.mxu0 %v1350_v0  ;;  %887 = vmatprep.mubr.bf16.mxu1 %v1350_v0  ;;  %v430_v62 = vsub.s32 5, %v1668_v7 }
  0x66   : > { %v411_v12 = vrot.slane %v1674_v9, %v410_v8  ;;  %v423_v16 = vrot.slane %v1674_v9, %v422_v11 }
  0x67   : > { %909 = vmatpush1.bf16.msra.mxu0 %v1223_v21  ;;  %970 = vmatpush1.bf16.msra.mxu1 %v1225_v22 }
  0x68   : > { %910 = vmatprep.subr.bf16.mxu0 %v1216_v23  ;;  %971 = vmatprep.subr.bf16.mxu1 %v1218_v24 }
  0x6a   : > { %827 = vmatmul.mubr.bf16.gmra.mxu0 %v1630_v27  ;;  %888 = vmatmul.mubr.bf16.gmra.mxu1 %v1630_v27 }
  0x6b   : > { %911 = vmatpush1.bf16.msra.mxu0 %v1215_v30  ;;  %972 = vmatpush1.bf16.msra.mxu1 %v1217_v31 }
  0x6c   : > { %912 = vmatprep.subr.bf16.mxu0 %v1208_v32  ;;  %973 = vmatprep.subr.bf16.mxu1 %v1210_v33 }
  0x6d   : > { %836 = vmatprep.mubr.bf16.mxu0 %v1350_v0  ;;  %897 = vmatprep.mubr.bf16.mxu1 %v1350_v0 }
  0x6f   : > { %913 = vmatpush1.bf16.msra.mxu0 %v1207_v38  ;;  %974 = vmatpush1.bf16.msra.mxu1 %v1209_v39 }
  0x70   : > { %914 = vmatprep.subr.bf16.mxu0 %v1200_v40  ;;  %975 = vmatprep.subr.bf16.mxu1 %v1202_v41 }
  0x72   : > { %837 = vmatmul.mubr.bf16.gmra.mxu0 %v1287_v44  ;;  %898 = vmatmul.mubr.bf16.gmra.mxu1 %v1287_v44 }
  0x73   : > { %915 = vmatpush1.bf16.msra.mxu0 %v1199_v47  ;;  %976 = vmatpush1.bf16.msra.mxu1 %v1201_v48 }
  0x74   : > { %916 = vmatprep.subr.bf16.mxu0 %v1192_v49  ;;  %977 = vmatprep.subr.bf16.mxu1 %v1194_v50 }
  0x75   : > { %938 = vmatprep.mubr.bf16.mxu0 %v1350_v0  ;;  %999 = vmatprep.mubr.bf16.mxu1 %v1350_v0 }
  0x77   : > { %917 = vmatpush1.bf16.msra.mxu0 %v1191_v55  ;;  %978 = vmatpush1.bf16.msra.mxu1 %v1193_v56 }
  0x78   : > { %918 = vmatprep.subr.bf16.mxu0 %v1184_v57  ;;  %979 = vmatprep.subr.bf16.mxu1 %v1186_v58 }
  0x7b   : > { %919 = vmatpush1.bf16.msra.mxu0 %v1183_v63  ;;  %980 = vmatpush1.bf16.msra.mxu1 %v1185_v1  ;;  %v438_v63 = vsub.s32 7, %v1668_v7  ;;  %v427_v1 = vrot.slane %v1674_v9, %v426_v60 }
  0x7c   : > { %920 = vmatprep.subr.bf16.mxu0 %v1176_v2  ;;  %981 = vmatprep.subr.bf16.mxu1 %v1178_v3  ;;  %v435_v2 = vrot.slane %v1674_v9, %v434_v61  ;;  %v431_v3 = vrot.slane %v1674_v9, %v430_v62 }
  0x7f   : > { %921 = vmatpush1.bf16.msra.mxu0 %v1175_v4  ;;  %982 = vmatpush1.bf16.msra.mxu1 %v1177_v5  ;;  %v439_v5 = vrot.slane %v1674_v9, %v438_v63 }
  0x82   : > { %939 = vmatmul.mubr.bf16.vlgmr.msra.gmra.mxu0 %v1613_v10  ;;  %1000 = vmatmul.mubr.bf16.vlgmr.msra.gmra.mxu1 %v1613_v10  ;;  %v418_v10 = vsub.s32 2, %v1668_v7 }
  0x83   : > { %948 = vmatprep.mubr.bf16.mxu0 %v1350_v0  ;;  %1009 = vmatprep.mubr.bf16.mxu1 %v1350_v0 }
  0x84   : > { %v419_v13 = vrot.slane %v1674_v9, %v418_v10 }
  0x8a   : > { %949 = vmatmul.mubr.bf16.gmra.mxu0 %v1630_v27  ;;  %1010 = vmatmul.mubr.bf16.gmra.mxu1 %v1630_v27 }
  0x8b   : > { %958 = vmatprep.mubr.bf16.mxu0 %v1350_v0  ;;  %1019 = vmatprep.mubr.bf16.mxu1 %v1350_v0  ;;  %v414_v0 = vsub.s32 1, %v1668_v7 }
  0x8d   : > { %v415_v14 = vrot.slane %v1674_v9, %v414_v0 }
  0x92   : > { %959 = vmatmul.mubr.bf16.gmra.mxu0 %v1287_v44  ;;  %1020 = vmatmul.mubr.bf16.gmra.mxu1 %v1287_v44 }
 0x122   : > { %v818_v15 = vpop.f32.mrf.mxu0  ;;  %v879_v18 = vpop.f32.mrf.mxu1 }
 0x123   : > { %v819_v17 = vadd.f32 %v818_v15, %v411_v12  ;;  %v880_v19 = vadd.f32 %v879_v18, %v419_v13 }
 0x124   : > { %v820_v20 = vpop.f32.mrf.mxu0  ;;  %v881_v22 = vpop.f32.mrf.mxu1 }
 0x125   : > { %1028 = vst [vmem:[%s1684_s27] sm:$0xff] %v819_v17  ;;  %v821_v21 = vadd.f32 %v820_v20, %v415_v14  ;;  %1030 = vst [vmem:[%s1684_s27 + $0x10] sm:$0xff] %v880_v19  ;;  %v882_v23 = vadd.f32 %v881_v22, %v423_v16 }
 0x126   : > { %v822_v24 = vpop.f32.mrf.mxu0  ;;  %v883_v26 = vpop.f32.mrf.mxu1 }
 0x127   : > { %1029 = vst [vmem:[%s1684_s27 + $0x8] sm:$0xff] %v821_v21  ;;  %v823_v25 = vadd.f32 %v822_v24, %v411_v12  ;;  %1031 = vst [vmem:[%s1684_s27 + $0x18] sm:$0xff] %v882_v23  ;;  %v884_v27 = vadd.f32 %v883_v26, %v419_v13 }
 0x128   : > { %v824_v28 = vpop.f32.mrf.mxu0  ;;  %v885_v30 = vpop.f32.mrf.mxu1 }
 0x129   : > { %1036 = vst [vmem:[%s1684_s27 + $0x40] sm:$0xff] %v823_v25  ;;  %v825_v29 = vadd.f32 %v824_v28, %v415_v14  ;;  %1038 = vst [vmem:[%s1684_s27 + $0x50] sm:$0xff] %v884_v27  ;;  %v886_v31 = vadd.f32 %v885_v30, %v423_v16 }
 0x12a   : > { %v828_v32 = vpop.f32.mrf.mxu0  ;;  %v889_v34 = vpop.f32.mrf.mxu1 }
 0x12b   : > { %1037 = vst [vmem:[%s1684_s27 + $0x48] sm:$0xff] %v825_v29  ;;  %v829_v33 = vadd.f32 %v828_v32, %v411_v12  ;;  %1039 = vst [vmem:[%s1684_s27 + $0x58] sm:$0xff] %v886_v31  ;;  %v890_v35 = vadd.f32 %v889_v34, %v419_v13 }
 0x12c   : > { %v830_v36 = vpop.f32.mrf.mxu0  ;;  %v891_v38 = vpop.f32.mrf.mxu1 }
 0x12d   : > { %1044 = vst [vmem:[%s1684_s27 + $0x80] sm:$0xff] %v829_v33  ;;  %v831_v37 = vadd.f32 %v830_v36, %v415_v14  ;;  %1046 = vst [vmem:[%s1684_s27 + $0x90] sm:$0xff] %v890_v35  ;;  %v892_v39 = vadd.f32 %v891_v38, %v423_v16 }
 0x12e   : > { %v832_v40 = vpop.f32.mrf.mxu0  ;;  %v893_v42 = vpop.f32.mrf.mxu1 }
 0x12f   : > { %1045 = vst [vmem:[%s1684_s27 + $0x88] sm:$0xff] %v831_v37  ;;  %v833_v41 = vadd.f32 %v832_v40, %v411_v12  ;;  %1047 = vst [vmem:[%s1684_s27 + $0x98] sm:$0xff] %v892_v39  ;;  %v894_v43 = vadd.f32 %v893_v42, %v419_v13 }
 0x130   : > { %v834_v44 = vpop.f32.mrf.mxu0  ;;  %v895_v46 = vpop.f32.mrf.mxu1 }
 0x131   : > { %1052 = vst [vmem:[%s1684_s27 + $0xc0] sm:$0xff] %v833_v41  ;;  %v835_v45 = vadd.f32 %v834_v44, %v415_v14  ;;  %1054 = vst [vmem:[%s1684_s27 + $0xd0] sm:$0xff] %v894_v43  ;;  %v896_v47 = vadd.f32 %v895_v46, %v423_v16 }
 0x132   : > { %v838_v48 = vpop.f32.mrf.mxu0  ;;  %v899_v50 = vpop.f32.mrf.mxu1 }
 0x133   : > { %1053 = vst [vmem:[%s1684_s27 + $0xc8] sm:$0xff] %v835_v45  ;;  %v839_v49 = vadd.f32 %v838_v48, %v411_v12  ;;  %1055 = vst [vmem:[%s1684_s27 + $0xd8] sm:$0xff] %v896_v47  ;;  %v900_v51 = vadd.f32 %v899_v50, %v419_v13 }
 0x134   : > { %v840_v52 = vpop.f32.mrf.mxu0  ;;  %v901_v54 = vpop.f32.mrf.mxu1 }
 0x135   : > { %1060 = vst [vmem:[%s1684_s27 + $0x100] sm:$0xff] %v839_v49  ;;  %v841_v53 = vadd.f32 %v840_v52, %v415_v14  ;;  %1062 = vst [vmem:[%s1684_s27 + $0x110] sm:$0xff] %v900_v51  ;;  %v902_v55 = vadd.f32 %v901_v54, %v423_v16 }
 0x136   : > { %v842_v56 = vpop.f32.mrf.mxu0  ;;  %v903_v57 = vpop.f32.mrf.mxu1 }
 0x137   : > { %1061 = vst [vmem:[%s1684_s27 + $0x108] sm:$0xff] %v841_v53  ;;  %1063 = vst [vmem:[%s1684_s27 + $0x118] sm:$0xff] %v902_v55 }
 0x138   : > { %v843_v58 = vpop.f32.mrf.mxu0  ;;  %v904_v59 = vpop.f32.mrf.mxu1 }
 0x142   : > { %v940_v4 = vpop.f32.mrf.mxu0  ;;  %v1001_v8 = vpop.f32.mrf.mxu1 }
 0x143   : > { %v941_v6 = vadd.f32 %v940_v4, %v427_v1  ;;  %v1002_v10 = vadd.f32 %v1001_v8, %v435_v2 }
 0x144   : > { %v942_v0 = vpop.f32.mrf.mxu0  ;;  %v1003_v7 = vpop.f32.mrf.mxu1 }
 0x145   : > { %1032 = vst [vmem:[%s1684_s27 + $0x20] sm:$0xff] %v941_v6  ;;  %v943_v11 = vadd.f32 %v942_v0, %v431_v3  ;;  %1034 = vst [vmem:[%s1684_s27 + $0x30] sm:$0xff] %v1002_v10  ;;  %v1004_v12 = vadd.f32 %v1003_v7, %v439_v5 }
 0x146   : > { %v944_v13 = vpop.f32.mrf.mxu0  ;;  %v1005_v15 = vpop.f32.mrf.mxu1 }
 0x147   : > { %1033 = vst [vmem:[%s1684_s27 + $0x28] sm:$0xff] %v943_v11  ;;  %v945_v14 = vadd.f32 %v944_v13, %v427_v1  ;;  %1035 = vst [vmem:[%s1684_s27 + $0x38] sm:$0xff] %v1004_v12  ;;  %v1006_v9 = vadd.f32 %v1005_v15, %v435_v2 }
 0x148   : > { %v946_v16 = vpop.f32.mrf.mxu0  ;;  %v1007_v18 = vpop.f32.mrf.mxu1 }
 0x149   : > { %1040 = vst [vmem:[%s1684_s27 + $0x60] sm:$0xff] %v945_v14  ;;  %v947_v17 = vadd.f32 %v946_v16, %v431_v3  ;;  %1042 = vst [vmem:[%s1684_s27 + $0x70] sm:$0xff] %v1006_v9  ;;  %v1008_v19 = vadd.f32 %v1007_v18, %v439_v5 }
 0x14a   : > { %v950_v20 = vpop.f32.mrf.mxu0  ;;  %v1011_v22 = vpop.f32.mrf.mxu1 }
 0x14b   : > { %1041 = vst [vmem:[%s1684_s27 + $0x68] sm:$0xff] %v947_v17  ;;  %v951_v21 = vadd.f32 %v950_v20, %v427_v1  ;;  %1043 = vst [vmem:[%s1684_s27 + $0x78] sm:$0xff] %v1008_v19  ;;  %v1012_v23 = vadd.f32 %v1011_v22, %v435_v2 }
 0x14c   : > { %v952_v24 = vpop.f32.mrf.mxu0  ;;  %v1013_v26 = vpop.f32.mrf.mxu1 }
 0x14d   : > { %1048 = vst [vmem:[%s1684_s27 + $0xa0] sm:$0xff] %v951_v21  ;;  %v953_v25 = vadd.f32 %v952_v24, %v431_v3  ;;  %1050 = vst [vmem:[%s1684_s27 + $0xb0] sm:$0xff] %v1012_v23  ;;  %v1014_v27 = vadd.f32 %v1013_v26, %v439_v5 }
 0x14e   : > { %v954_v28 = vpop.f32.mrf.mxu0  ;;  %v1015_v30 = vpop.f32.mrf.mxu1 }
 0x14f   : > { %1049 = vst [vmem:[%s1684_s27 + $0xa8] sm:$0xff] %v953_v25  ;;  %v955_v29 = vadd.f32 %v954_v28, %v427_v1  ;;  %1051 = vst [vmem:[%s1684_s27 + $0xb8] sm:$0xff] %v1014_v27  ;;  %v1016_v31 = vadd.f32 %v1015_v30, %v435_v2 }
 0x150   : > { %v956_v32 = vpop.f32.mrf.mxu0  ;;  %v1017_v34 = vpop.f32.mrf.mxu1 }
 0x151   : > { %1056 = vst [vmem:[%s1684_s27 + $0xe0] sm:$0xff] %v955_v29  ;;  %v957_v33 = vadd.f32 %v956_v32, %v431_v3  ;;  %1058 = vst [vmem:[%s1684_s27 + $0xf0] sm:$0xff] %v1016_v31  ;;  %v1018_v35 = vadd.f32 %v1017_v34, %v439_v5 }
 0x152   : > { %v960_v36 = vpop.f32.mrf.mxu0  ;;  %v1021_v38 = vpop.f32.mrf.mxu1 }
 0x153   : > { %1057 = vst [vmem:[%s1684_s27 + $0xe8] sm:$0xff] %v957_v33  ;;  %v961_v37 = vadd.f32 %v960_v36, %v427_v1  ;;  %1059 = vst [vmem:[%s1684_s27 + $0xf8] sm:$0xff] %v1018_v35  ;;  %v1022_v39 = vadd.f32 %v1021_v38, %v435_v2 }
 0x154   : > { %v962_v40 = vpop.f32.mrf.mxu0  ;;  %v1023_v42 = vpop.f32.mrf.mxu1 }
 0x155   : > { %1064 = vst [vmem:[%s1684_s27 + $0x120] sm:$0xff] %v961_v37  ;;  %v963_v41 = vadd.f32 %v962_v40, %v431_v3  ;;  %1066 = vst [vmem:[%s1684_s27 + $0x130] sm:$0xff] %v1022_v39  ;;  %v1024_v43 = vadd.f32 %v1023_v42, %v439_v5 }
 0x156   : > { %v964_v44 = vpop.f32.mrf.mxu0  ;;  %v1025_v45 = vpop.f32.mrf.mxu1 }
 0x157   : > { %1065 = vst [vmem:[%s1684_s27 + $0x128] sm:$0xff] %v963_v41  ;;  %1067 = vst [vmem:[%s1684_s27 + $0x138] sm:$0xff] %v1024_v43 }
 0x158   : > { %v965_v46 = vpop.f32.mrf.mxu0  ;;  %v1026_v47 = vpop.f32.mrf.mxu1 }
 0x159   : > { %1301 = shalt.err (!%p1298_p7)
}
 0x15a   : > { %s1302_s11 = scalar_lea.hbm %s1735_s6, 5120  ;;  %s1306_s20 = scalar_lea.hbm %s1787_s3, 10240 }
 0x15b   : > { %p1303_p10 = scmp.ne.s32.totalorder %s1735_s6, %s1302_s11  ;;  %p1307_p13 = scmp.lt.s32.totalorder %s1735_s6, %s1787_s3 }
 0x15c   : > { %p1308_p0 = scmp.lt.s32.totalorder %s1306_s20, %s1302_s11 }
 0x15d   : > { %p1304_p11 = pnand %p1303_p10, %p1414_p6 }
 0x15e   : > { %p1309_p1 = por %p1308_p0, %p1307_p13 }
 0x15f   : > { %p1305_p12 = pneg %p1304_p11 }
 0x161   : > { %p1310_p2 = pnand %p1309_p1, %p1305_p12 }
 0x163   : > { %1313 = shalt.err (!%p1310_p2)
}
 0x164   : > { %s1352_s26 = smov 1024   ;;  %s1353_s27 = smov 2048  }
 0x165   : > { %s1354_s28 = smov 64  }
 0x166   : > { %1242 = dma.vmem_to_hbm [thread:$0]  (%p1414_p6), %s1738_s29, 5120, %s1735_s6, %s1069_s16, %s1352_s26, %s1353_s27, %s1354_s28  }
 0x167 PF: > { %s1097_s30 = sand.u32 1, %s1336_s12   ;;  %p1245_p3 = pnand %p1161_p9, %p1418_p8 }
 0x168   : > { %s1098_s5 = scalar_lea.sflag [#allocation4], %s1097_s30 }
 0x169   : > { %p1246_p4 = pneg %p1245_p3 }
 0x16b   : > { %1331 = dma.done.wait (%p1246_p4), %s1098_s5, 5120  }
 0x16c   : > { %1333 = vsyncadd (%p1246_p4), %s1098_s5, 4294962176  ;;  %p13_p5 = scmp.ge.s32.totalorder %s1400_s18, 4   ;;  %s1790_s12 = smov %s1340_s13 }
 0x16d   : > { %s1791_s13 = smov %s1344_s14  ;;  %s1792_s14 = smov %s1412_s21 }
 0x16e   : > { %s1793_s15 = smov %s1400_s18  ;;  %15 = sbr.rel (!%p13_p5) target bundleno = 3 (0x3), region = 98 }
 0x173   :  { %1103 = vsyncpa [#allocation4], 1 }
 0x174   :  { %1105 = vsyncpa [#allocation4 + $0x1], 1 }

// kernel: seq2seq_forward.2
= control target key start
LH: loop header
LB: loop body
LE: loop exit
PB: predicated region body
PF: predicated region fallthrough
CT: control target
= control target key end

     0   :  { %14 = vsyncpa [#allocation3], 0  ;;  %s2122_s0 = inlined_call_operand.vmem [shape: bf16[5,8,128], index: 0, kind: input, shape index: {}]   ;;  %s2123_s1 = inlined_call_operand.vmem [shape: f32[2,8,128], index: 1, kind: input, shape index: {}, may-alias: {1,7}]   ;;  %s2124_s2 = inlined_call_operand.vmem [shape: f32[2,8,128], index: 2, kind: input, shape index: {}, may-alias: {2,8}]   ;;  %s2125_s3 = inlined_call_operand.hbm [shape: bf16[256,512], index: 3, kind: input, shape index: {}]   ;;  %s2126_s4 = inlined_call_operand.hbm [shape: bf16[1,256,512], index: 4, kind: input, shape index: {}]   ;;  %s2127_s5 = inlined_call_operand.vmem [shape: f32[2,1,512], index: 5, kind: input, shape index: {}]   ;;  %s2128_s6 = inlined_call_operand.vmem [shape: bf16[5,8,128], index: 6, kind: output, shape index: {0}]   ;;  %s2129_s7 = inlined_call_operand.vmem [shape: f32[2,8,128], index: 7, kind: output, shape index: {1}, may-alias: {1,7}]   ;;  %s2130_s8 = inlined_call_operand.vmem [shape: f32[2,8,128], index: 8, kind: output, shape index: {2}, may-alias: {2,8}]  }
   0x1   :  { %15 = vsyncpa [#allocation5], 0  ;;  %s1991_s27 = smov 0  }
   0x2 LB: > { %s1997_s28 = sadd.s32 4294967295, %s1940_s27   ;;  %p1468_p0 = scmp.ge.s32.totalorder %s1940_s27, 1  ;;  %s1940_s27 = sphi %s1991_s27, %s21_s27  }
   0x3   : > { %p225_p1 = scmp.lt.s32.totalorder %s1940_s27, 6  ;;  %s1942_s29 = smov [#allocation2]  }
   0x4   : > { %s243_s30 = sshll.u32 %s1942_s29, 4  ;;  %p1634_p4 = scmp.eq.s32.totalorder %s1997_s28, 0  ;;  %s244_s30 = int_to_ptr.vmem [resolvable:$true] %s243_s30 }
   0x5   : > { %p2002_p3 = pnand %p1468_p0, %p225_p1  ;;  %s1943_s10 = smov [#allocation4]  }
   0x6   : > { %s256_s11 = sshll.u32 %s1943_s10, 4  ;;  %s1885_s13 = scalar_lea.vmem %s244_s30, 8192  ;;  %s257_s11 = int_to_ptr.vmem [resolvable:$true] %s256_s11 }
   0x7   : > { %p1627_p5 = pneg %p2002_p3  ;;  %p1886_p8 = scmp.ne.s32.totalorder %s244_s30, %s1885_s13 }
   0x8   : > { %p1893_p11 = scmp.lt.s32.totalorder %s244_s30, %s244_s30  ;;  %p1894_p12 = scmp.lt.s32.totalorder %s1885_s13, %s1885_s13 }
   0x9   : > { %p2011_p6 = pnand %p1634_p4, %p1627_p5 }
   0xa   : > { %p1895_p13 = por %p1894_p12, %p1893_p11 }
   0xb   : > { %p1876_p7 = pneg %p2011_p6 }
   0xd   : > { %p1888_p9 = pnand %p1886_p8, %p1876_p7 }
   0xf   : > { %p1889_p10 = pneg %p1888_p9 }
  0x11   : > { %p1896_p0 = pnand %p1895_p13, %p1889_p10 }
  0x13   : > { %1899 = shalt.err (!%p1896_p0)
}
  0x14   : > { %s1944_s14 = smov 256   ;;  %s1945_s15 = smov 16  }
  0x15   : > { %1630 = dma.hbm_to_vmem [thread:$0]  (!%p2011_p6), %s2125_s3, 8192, %s244_s30, [#allocation3], %s1944_s14, %s1944_s14, %s1945_s15  }
  0x16   : > { %s1911_s18 = scalar_lea.vmem %s257_s11, 8192  ;;  %p1919_p9 = scmp.lt.s32.totalorder %s257_s11, %s257_s11 }
  0x17   : > { %p1912_p1 = scmp.ne.s32.totalorder %s257_s11, %s1911_s18  ;;  %p1920_p2 = scmp.lt.s32.totalorder %s1911_s18, %s1911_s18 }
  0x19   : > { %p1914_p5 = pnand %p1912_p1, %p1876_p7  ;;  %p1921_p11 = por %p1920_p2, %p1919_p9 }
  0x1b   : > { %p1915_p8 = pneg %p1914_p5 }
  0x1d   : > { %p1922_p10 = pnand %p1921_p11, %p1915_p8 }
  0x1f   : > { %1925 = shalt.err (!%p1922_p10)
}
  0x20   : > { %1633 = dma.hbm_to_vmem [thread:$0]  (!%p2011_p6), %s2126_s4, 8192, %s257_s11, [#allocation5], %s1944_s14, %s1944_s14, %s1945_s15  }
  0x21   : > { %282 = sbr.rel (%p2002_p3) target bundleno = 628 (0x274), region = 44 }
  0x26   : > { %1931 = dma.done.wait (%p1634_p4), [#allocation3], 8192  }
  0x27   : > { %1933 = vsyncadd (%p1634_p4), [#allocation3], 4294959104 }
  0x28   : > { %1935 = dma.done.wait (%p1634_p4), [#allocation5], 8192  }
  0x29   : > { %1937 = vsyncadd (%p1634_p4), [#allocation5], 4294959104  ;;  %p318_p2 = scmp.lt.s32.totalorder %s1997_s28, 4  ;;  %p2133_p3 = scmp.ne.s32.totalorder %s1997_s28, 0 }
  0x2b   : > { %s319_s21 = scalar_select %p318_p2, %s1997_s28, 4 }
  0x2c   : > { %329 = sbr.rel (%p2133_p3) target bundleno = 60 (0x3c), region = 56 }
  0x2d   : > { %s1475_s22 = sshll.u32 %s319_s21, 2 }
  0x2e   : > { %s2048_s25 = scalar_lea.vmem %s2122_s0, %s1475_s22  ;;  %s2053_s30 = scalar_lea.vmem %s2128_s6, %s1475_s22 }
  0x31   : > { %v330_v0 = vld [vmem:[%s2123_s1] sm:$0xff]  ;;  %v331_v1 = vld [vmem:[%s2123_s1 + $0x8] sm:$0xff] }
  0x32   : > { %v334_v2 = vld [vmem:[%s2124_s2] sm:$0xff]  ;;  %332 = vst [vmem:[%s2129_s7] sm:$0xff] %v330_v0  ;;  %333 = vst [vmem:[%s2129_s7 + $0x8] sm:$0xff] %v331_v1 }
  0x33   : > { %336 = vst [vmem:[%s2130_s8] sm:$0xff] %v334_v2 }
  0x3a   : > { %v335_v3 = vld [vmem:[%s2124_s2 + $0x8] sm:$0xff] }
  0x3b   : > { %337 = vst [vmem:[%s2130_s8 + $0x8] sm:$0xff] %v335_v3 }
  0x3c PF: > { %v1650_v4 = vld [vmem:[#allocation2 + $0xe4] ss:$16 sps:$4 sm:$0xff]   ;;  %v1652_v5 = vld [vmem:[#allocation2 + $0xe0] ss:$16 sps:$4 sm:$0xff]   ;;  %v1661_v9 = vld [vmem:[#allocation2 + $0xec] ss:$16 sps:$4 sm:$0xff]  }
  0x3d   : > { %748 = vmatprep.subr.bf16.mxu0 %v1650_v4  ;;  %v1653_v6 = vld [vmem:[#allocation2 + $0xc4] ss:$16 sps:$4 sm:$0xff]   ;;  %v1655_v7 = vld [vmem:[#allocation2 + $0xc0] ss:$16 sps:$4 sm:$0xff]   ;;  %v1664_v10 = vld [vmem:[#allocation2 + $0xe8] ss:$16 sps:$4 sm:$0xff]   ;;  %789 = vmatprep.subr.bf16.mxu1 %v1661_v9 }
  0x3e   : > { %749 = vmatpush1.bf16.msra.mxu0 %v1652_v5  ;;  %v1656_v8 = vld [vmem:[#allocation2 + $0xa4] ss:$16 sps:$4 sm:$0xff]   ;;  %v1658_v11 = vld [vmem:[#allocation2 + $0xa0] ss:$16 sps:$4 sm:$0xff]   ;;  %790 = vmatpush1.bf16.msra.mxu1 %v1664_v10  ;;  %v1667_v13 = vld [vmem:[#allocation2 + $0xcc] ss:$16 sps:$4 sm:$0xff]  }
  0x3f   : > { %750 = vmatprep.subr.bf16.mxu0 %v1653_v6  ;;  %v1659_v12 = vld [vmem:[#allocation2 + $0x84] ss:$16 sps:$4 sm:$0xff]   ;;  %v1670_v14 = vld [vmem:[#allocation2 + $0xc8] ss:$16 sps:$4 sm:$0xff]   ;;  %791 = vmatprep.subr.bf16.mxu1 %v1667_v13  ;;  %v1663_v15 = vld [vmem:[#allocation2 + $0x80] ss:$16 sps:$4 sm:$0xff]  }
  0x40   : > { %v1665_v16 = vld [vmem:[#allocation2 + $0x64] ss:$16 sps:$4 sm:$0xff]   ;;  %v1673_v17 = vld [vmem:[#allocation2 + $0xac] ss:$16 sps:$4 sm:$0xff]   ;;  %v1676_v18 = vld [vmem:[#allocation2 + $0xa8] ss:$16 sps:$4 sm:$0xff]  }
  0x41   : > { %v1679_v19 = vld [vmem:[#allocation2 + $0x8c] ss:$16 sps:$4 sm:$0xff]   ;;  %v1669_v20 = vld [vmem:[#allocation2 + $0x60] ss:$16 sps:$4 sm:$0xff]   ;;  %v1671_v21 = vld [vmem:[#allocation2 + $0x44] ss:$16 sps:$4 sm:$0xff]  }
  0x42   : > { %751 = vmatpush1.bf16.msra.mxu0 %v1655_v7  ;;  %792 = vmatpush1.bf16.msra.mxu1 %v1670_v14  ;;  %v1682_v22 = vld [vmem:[#allocation2 + $0x88] ss:$16 sps:$4 sm:$0xff]   ;;  %v1685_v23 = vld [vmem:[#allocation2 + $0x6c] ss:$16 sps:$4 sm:$0xff]   ;;  %v1675_v24 = vld [vmem:[#allocation2 + $0x40] ss:$16 sps:$4 sm:$0xff]  }
  0x43   : > { %752 = vmatprep.subr.bf16.mxu0 %v1656_v8  ;;  %793 = vmatprep.subr.bf16.mxu1 %v1673_v17  ;;  %v1677_v25 = vld [vmem:[#allocation2 + $0x24] ss:$16 sps:$4 sm:$0xff]   ;;  %v1688_v26 = vld [vmem:[#allocation2 + $0x68] ss:$16 sps:$4 sm:$0xff]   ;;  %v1691_v27 = vld [vmem:[#allocation2 + $0x4c] ss:$16 sps:$4 sm:$0xff]  }
  0x44   : > { %v1681_v28 = vld [vmem:[#allocation2 + $0x20] ss:$16 sps:$4 sm:$0xff]   ;;  %v1683_v29 = vld [vmem:[#allocation2 + $0x4] ss:$16 sps:$4 sm:$0xff]   ;;  %v1694_v30 = vld [vmem:[#allocation2 + $0x48] ss:$16 sps:$4 sm:$0xff]  }
  0x45   : > { %v1697_v31 = vld [vmem:[#allocation2 + $0x2c] ss:$16 sps:$4 sm:$0xff]   ;;  %v1687_v32 = vld [vmem:[#allocation2] ss:$16 sps:$4 sm:$0xff]   ;;  %v1689_v33 = vld [vmem:[#allocation2 + $0x1e4] ss:$16 sps:$4 sm:$0xff]  }
  0x46   : > { %753 = vmatpush1.bf16.msra.mxu0 %v1658_v11  ;;  %794 = vmatpush1.bf16.msra.mxu1 %v1676_v18  ;;  %v1700_v34 = vld [vmem:[#allocation2 + $0x28] ss:$16 sps:$4 sm:$0xff]   ;;  %v1703_v35 = vld [vmem:[#allocation2 + $0xc] ss:$16 sps:$4 sm:$0xff]   ;;  %v1693_v36 = vld [vmem:[#allocation2 + $0x1e0] ss:$16 sps:$4 sm:$0xff]  }
  0x47   : > { %754 = vmatprep.subr.bf16.mxu0 %v1659_v12  ;;  %795 = vmatprep.subr.bf16.mxu1 %v1679_v19  ;;  %v1695_v37 = vld [vmem:[#allocation2 + $0x1c4] ss:$16 sps:$4 sm:$0xff]   ;;  %v1706_v38 = vld [vmem:[#allocation2 + $0x8] ss:$16 sps:$4 sm:$0xff]   ;;  %v1709_v39 = vld [vmem:[#allocation2 + $0x1ec] ss:$16 sps:$4 sm:$0xff]  }
  0x48   : > { %v1699_v40 = vld [vmem:[#allocation2 + $0x1c0] ss:$16 sps:$4 sm:$0xff]   ;;  %v1701_v41 = vld [vmem:[#allocation2 + $0x1a4] ss:$16 sps:$4 sm:$0xff]   ;;  %v1712_v42 = vld [vmem:[#allocation2 + $0x1e8] ss:$16 sps:$4 sm:$0xff]  }
  0x49   : > { %v1715_v43 = vld [vmem:[#allocation2 + $0x1cc] ss:$16 sps:$4 sm:$0xff]   ;;  %v339_v44 = vld [vmem:[%s2129_s7] sm:$0xff]  ;;  %v1718_v48 = vld [vmem:[#allocation2 + $0x1c8] ss:$16 sps:$4 sm:$0xff]  }
  0x4a   : > { %755 = vmatpush1.bf16.msra.mxu0 %v1663_v15  ;;  %796 = vmatpush1.bf16.msra.mxu1 %v1682_v22  ;;  %v1705_v45 = vld [vmem:[#allocation2 + $0x1a0] ss:$16 sps:$4 sm:$0xff]   ;;  %v405_v46 = vpack.c.bf16 %v339_v44, %v339_v44  ;;  %v1707_v47 = vld [vmem:[#allocation2 + $0x184] ss:$16 sps:$4 sm:$0xff]   ;;  %v1721_v49 = vld [vmem:[#allocation2 + $0x1ac] ss:$16 sps:$4 sm:$0xff]  }
  0x4b   : > { %756 = vmatprep.subr.bf16.mxu0 %v1665_v16  ;;  %797 = vmatprep.subr.bf16.mxu1 %v1685_v23  ;;  %v1711_v50 = vld [vmem:[#allocation2 + $0x180] ss:$16 sps:$4 sm:$0xff]   ;;  %v1713_v51 = vld [vmem:[#allocation2 + $0x164] ss:$16 sps:$4 sm:$0xff]   ;;  %v1724_v52 = vld [vmem:[#allocation2 + $0x1a8] ss:$16 sps:$4 sm:$0xff]  }
  0x4c   : > { %780 = vmatprep.mubr.bf16.mxu0 %v405_v46  ;;  %821 = vmatprep.mubr.bf16.mxu1 %v405_v46  ;;  %v1727_v53 = vld [vmem:[#allocation2 + $0x18c] ss:$16 sps:$4 sm:$0xff]   ;;  %v1717_v54 = vld [vmem:[#allocation2 + $0x160] ss:$16 sps:$4 sm:$0xff]   ;;  %v1719_v55 = vld [vmem:[#allocation2 + $0x144] ss:$16 sps:$4 sm:$0xff]  }
  0x4d   : > { %v1730_v56 = vld [vmem:[#allocation2 + $0x188] ss:$16 sps:$4 sm:$0xff]   ;;  %v1733_v57 = vld [vmem:[#allocation2 + $0x16c] ss:$16 sps:$4 sm:$0xff]   ;;  %v1723_v58 = vld [vmem:[#allocation2 + $0x140] ss:$16 sps:$4 sm:$0xff]  }
  0x4e   : > { %757 = vmatpush1.bf16.msra.mxu0 %v1669_v20  ;;  %798 = vmatpush1.bf16.msra.mxu1 %v1688_v26  ;;  %v1725_v59 = vld [vmem:[#allocation2 + $0x124] ss:$16 sps:$4 sm:$0xff]   ;;  %v1736_v60 = vld [vmem:[#allocation2 + $0x168] ss:$16 sps:$4 sm:$0xff]   ;;  %v1737_v61 = vld [vmem:[#allocation2 + $0x14c] ss:$16 sps:$4 sm:$0xff]  }
  0x4f   : > { %758 = vmatprep.subr.bf16.mxu0 %v1671_v21  ;;  %799 = vmatprep.subr.bf16.mxu1 %v1691_v27  ;;  %v1729_v62 = vld [vmem:[#allocation2 + $0x120] ss:$16 sps:$4 sm:$0xff]   ;;  %v1731_v63 = vld [vmem:[#allocation2 + $0x104] ss:$16 sps:$4 sm:$0xff]   ;;  %v1739_v0 = vld [vmem:[#allocation2 + $0x148] ss:$16 sps:$4 sm:$0xff]  }
  0x50   : > { %v1740_v1 = vld [vmem:[#allocation2 + $0x12c] ss:$16 sps:$4 sm:$0xff]   ;;  %v1735_v2 = vld [vmem:[#allocation2 + $0x100] ss:$16 sps:$4 sm:$0xff]   ;;  %v1742_v3 = vld [vmem:[#allocation2 + $0x128] ss:$16 sps:$4 sm:$0xff]  }
  0x51   : > { %v1748_v4 = vld [vmem:[#allocation4 + $0xe4] ss:$16 sps:$4 sm:$0xff]   ;;  %v1743_v5 = vld [vmem:[#allocation2 + $0x10c] ss:$16 sps:$4 sm:$0xff]   ;;  %v338_v6 = vld [vmem:[%s2048_s25] sm:$0xf] }
  0x52   : > { %759 = vmatpush1.bf16.msra.mxu0 %v1675_v24  ;;  %800 = vmatpush1.bf16.msra.mxu1 %v1694_v30  ;;  %v1746_v7 = vld [vmem:[#allocation4 + $0xe0] ss:$16 sps:$4 sm:$0xff]   ;;  %v1745_v8 = vld [vmem:[#allocation2 + $0x108] ss:$16 sps:$4 sm:$0xff]   ;;  %v1754_v9 = vld [vmem:[#allocation4 + $0xc4] ss:$16 sps:$4 sm:$0xff]  }
  0x53   : > { %760 = vmatprep.subr.bf16.mxu0 %v1677_v25  ;;  %801 = vmatprep.subr.bf16.mxu1 %v1697_v31  ;;  %v1751_v10 = vld [vmem:[#allocation4 + $0xec] ss:$16 sps:$4 sm:$0xff]   ;;  %v1752_v11 = vld [vmem:[#allocation4 + $0xc0] ss:$16 sps:$4 sm:$0xff]   ;;  %v1749_v12 = vld [vmem:[#allocation4 + $0xe8] ss:$16 sps:$4 sm:$0xff]  }
  0x54   : > { %v1757_v13 = vld [vmem:[#allocation4 + $0xcc] ss:$16 sps:$4 sm:$0xff]   ;;  %v1755_v14 = vld [vmem:[#allocation4 + $0xc8] ss:$16 sps:$4 sm:$0xff]   ;;  %v1760_v15 = vld [vmem:[#allocation4 + $0xa4] ss:$16 sps:$4 sm:$0xff]  }
  0x55   : > { %v1763_v16 = vld [vmem:[#allocation4 + $0xac] ss:$16 sps:$4 sm:$0xff]   ;;  %v1758_v17 = vld [vmem:[#allocation4 + $0xa0] ss:$16 sps:$4 sm:$0xff]   ;;  %v1761_v18 = vld [vmem:[#allocation4 + $0xa8] ss:$16 sps:$4 sm:$0xff]  }
  0x56   : > { %761 = vmatpush1.bf16.msra.mxu0 %v1681_v28  ;;  %802 = vmatpush1.bf16.msra.mxu1 %v1700_v34  ;;  %v1766_v19 = vld [vmem:[#allocation4 + $0x84] ss:$16 sps:$4 sm:$0xff]   ;;  %v1769_v20 = vld [vmem:[#allocation4 + $0x8c] ss:$16 sps:$4 sm:$0xff]   ;;  %v1764_v21 = vld [vmem:[#allocation4 + $0x80] ss:$16 sps:$4 sm:$0xff]  }
  0x57   : > { %762 = vmatprep.subr.bf16.mxu0 %v1683_v29  ;;  %803 = vmatprep.subr.bf16.mxu1 %v1703_v35  ;;  %v1767_v22 = vld [vmem:[#allocation4 + $0x88] ss:$16 sps:$4 sm:$0xff]   ;;  %v1772_v23 = vld [vmem:[#allocation4 + $0x64] ss:$16 sps:$4 sm:$0xff]   ;;  %v1775_v24 = vld [vmem:[#allocation4 + $0x6c] ss:$16 sps:$4 sm:$0xff]  }
  0x58   : > { %v1770_v25 = vld [vmem:[#allocation4 + $0x60] ss:$16 sps:$4 sm:$0xff]   ;;  %v1773_v26 = vld [vmem:[#allocation4 + $0x68] ss:$16 sps:$4 sm:$0xff]   ;;  %v1778_v27 = vld [vmem:[#allocation4 + $0x44] ss:$16 sps:$4 sm:$0xff]  }
  0x59   : > { %v1781_v28 = vld [vmem:[#allocation4 + $0x4c] ss:$16 sps:$4 sm:$0xff]   ;;  %v1776_v29 = vld [vmem:[#allocation4 + $0x40] ss:$16 sps:$4 sm:$0xff]   ;;  %v1779_v30 = vld [vmem:[#allocation4 + $0x48] ss:$16 sps:$4 sm:$0xff]  }
  0x5a   : > { %763 = vmatpush1.bf16.msra.mxu0 %v1687_v32  ;;  %804 = vmatpush1.bf16.msra.mxu1 %v1706_v38  ;;  %v1784_v31 = vld [vmem:[#allocation4 + $0x24] ss:$16 sps:$4 sm:$0xff]   ;;  %v1787_v32 = vld [vmem:[#allocation4 + $0x2c] ss:$16 sps:$4 sm:$0xff]   ;;  %v1785_v34 = vld [vmem:[#allocation4 + $0x28] ss:$16 sps:$4 sm:$0xff]  }
  0x5b   : > { %764 = vmatprep.subr.bf16.mxu0 %v1689_v33  ;;  %805 = vmatprep.subr.bf16.mxu1 %v1709_v39  ;;  %v1782_v33 = vld [vmem:[#allocation4 + $0x20] ss:$16 sps:$4 sm:$0xff]   ;;  %v1790_v35 = vld [vmem:[#allocation4 + $0x4] ss:$16 sps:$4 sm:$0xff]   ;;  %v1791_v38 = vld [vmem:[#allocation4 + $0x8] ss:$16 sps:$4 sm:$0xff]  }
  0x5c   : > { %v1796_v39 = vld [vmem:[#allocation4 + $0x1e4] ss:$16 sps:$4 sm:$0xff]   ;;  %v1805_v44 = vld [vmem:[#allocation4 + $0x1cc] ss:$16 sps:$4 sm:$0xff]   ;;  %v1803_v46 = vld [vmem:[#allocation4 + $0x1c8] ss:$16 sps:$4 sm:$0xff]  }
  0x5e   : > { %765 = vmatpush2.bf16.msra.mxu0 %v1693_v36  ;;  %806 = vmatpush2.bf16.msra.mxu1 %v1712_v42  ;;  %v1793_v36 = vld [vmem:[#allocation4 + $0xc] ss:$16 sps:$4 sm:$0xff]   ;;  %v1797_v42 = vld [vmem:[#allocation4 + $0x1e8] ss:$16 sps:$4 sm:$0xff]  }
  0x5f   : > { %766 = vmatprep.subr.bf16.mxu0 %v1695_v37  ;;  %807 = vmatprep.subr.bf16.mxu1 %v1715_v43  ;;  %v1788_v37 = vld [vmem:[#allocation4] ss:$16 sps:$4 sm:$0xff]   ;;  %v1802_v43 = vld [vmem:[#allocation4 + $0x1c4] ss:$16 sps:$4 sm:$0xff]  }
  0x62   : > { %767 = vmatpush2.bf16.msra.mxu0 %v1699_v40  ;;  %808 = vmatpush2.bf16.msra.mxu1 %v1718_v48  ;;  %v1799_v40 = vld [vmem:[#allocation4 + $0x1ec] ss:$16 sps:$4 sm:$0xff]  }
  0x63   : > { %768 = vmatprep.subr.bf16.mxu0 %v1701_v41  ;;  %809 = vmatprep.subr.bf16.mxu1 %v1721_v49  ;;  %v1794_v41 = vld [vmem:[#allocation4 + $0x1e0] ss:$16 sps:$4 sm:$0xff]   ;;  %v1811_v48 = vld [vmem:[#allocation4 + $0x1ac] ss:$16 sps:$4 sm:$0xff]  }
  0x64   : > { %v1806_v49 = vld [vmem:[#allocation4 + $0x1a0] ss:$16 sps:$4 sm:$0xff]  }
  0x66   : > { %769 = vmatpush2.bf16.msra.mxu0 %v1705_v45  ;;  %810 = vmatpush2.bf16.msra.mxu1 %v1724_v52  ;;  %v1800_v45 = vld [vmem:[#allocation4 + $0x1c0] ss:$16 sps:$4 sm:$0xff]   ;;  %v1817_v52 = vld [vmem:[#allocation4 + $0x18c] ss:$16 sps:$4 sm:$0xff]  }
  0x67   : > { %770 = vmatprep.subr.bf16.mxu0 %v1707_v47  ;;  %811 = vmatprep.subr.bf16.mxu1 %v1727_v53  ;;  %v1808_v47 = vld [vmem:[#allocation4 + $0x1a4] ss:$16 sps:$4 sm:$0xff]   ;;  %v1812_v53 = vld [vmem:[#allocation4 + $0x180] ss:$16 sps:$4 sm:$0xff]  }
  0x6a   : > { %771 = vmatpush2.bf16.msra.mxu0 %v1711_v50  ;;  %812 = vmatpush2.bf16.msra.mxu1 %v1730_v56  ;;  %v1809_v50 = vld [vmem:[#allocation4 + $0x1a8] ss:$16 sps:$4 sm:$0xff]   ;;  %v1820_v56 = vld [vmem:[#allocation4 + $0x164] ss:$16 sps:$4 sm:$0xff]  }
  0x6b   : > { %772 = vmatprep.subr.bf16.mxu0 %v1713_v51  ;;  %813 = vmatprep.subr.bf16.mxu1 %v1733_v57  ;;  %v1814_v51 = vld [vmem:[#allocation4 + $0x184] ss:$16 sps:$4 sm:$0xff]   ;;  %v1821_v57 = vld [vmem:[#allocation4 + $0x168] ss:$16 sps:$4 sm:$0xff]  }
  0x6e   : > { %773 = vmatpush2.bf16.msra.mxu0 %v1717_v54  ;;  %814 = vmatpush2.bf16.msra.mxu1 %v1736_v60  ;;  %v1815_v54 = vld [vmem:[#allocation4 + $0x188] ss:$16 sps:$4 sm:$0xff]   ;;  %v1829_v60 = vld [vmem:[#allocation4 + $0x14c] ss:$16 sps:$4 sm:$0xff]  }
  0x6f   : > { %774 = vmatprep.subr.bf16.mxu0 %v1719_v55  ;;  %815 = vmatprep.subr.bf16.mxu1 %v1737_v61  ;;  %v1818_v55 = vld [vmem:[#allocation4 + $0x160] ss:$16 sps:$4 sm:$0xff]  }
  0x70   : > { %v1824_v61 = vld [vmem:[#allocation4 + $0x140] ss:$16 sps:$4 sm:$0xff]  }
  0x72   : > { %775 = vmatpush2.bf16.msra.mxu0 %v1723_v58  ;;  %816 = vmatpush2.bf16.msra.mxu1 %v1739_v0  ;;  %v1823_v58 = vld [vmem:[#allocation4 + $0x16c] ss:$16 sps:$4 sm:$0xff]  }
  0x73   : > { %776 = vmatprep.subr.bf16.mxu0 %v1725_v59  ;;  %817 = vmatprep.subr.bf16.mxu1 %v1740_v1  ;;  %v1826_v59 = vld [vmem:[#allocation4 + $0x144] ss:$16 sps:$4 sm:$0xff]   ;;  %v1835_v0 = vld [vmem:[#allocation4 + $0x12c] ss:$16 sps:$4 sm:$0xff]  }
  0x74   : > { %v1545_v1 = vld [vmem:[%s2129_s7 + $0x8] sm:$0xff] }
  0x76   : > { %777 = vmatpush2.bf16.msra.mxu0 %v1729_v62  ;;  %818 = vmatpush2.bf16.msra.mxu1 %v1742_v3  ;;  %v1827_v62 = vld [vmem:[#allocation4 + $0x148] ss:$16 sps:$4 sm:$0xff]   ;;  %v1830_v3 = vld [vmem:[#allocation4 + $0x120] ss:$16 sps:$4 sm:$0xff]  }
  0x77   : > { %778 = vmatprep.subr.bf16.mxu0 %v1731_v63  ;;  %819 = vmatprep.subr.bf16.mxu1 %v1743_v5  ;;  %v1832_v63 = vld [vmem:[#allocation4 + $0x124] ss:$16 sps:$4 sm:$0xff]  }
  0x78   : > { %v1838_v5 = vld [vmem:[#allocation4 + $0x104] ss:$16 sps:$4 sm:$0xff]  }
  0x7a   : > { %779 = vmatpush2.bf16.msra.mxu0 %v1735_v2  ;;  %820 = vmatpush2.bf16.msra.mxu1 %v1745_v8  ;;  %v925_v2 = vpack.c.bf16 %v1545_v1, %v1545_v1  ;;  %v1839_v8 = vld [vmem:[#allocation4 + $0x108] ss:$16 sps:$4 sm:$0xff]  }
  0x7b   : > { %1269 = vmatprep.subr.bf16.mxu0 %v1748_v4  ;;  %1310 = vmatprep.subr.bf16.mxu1 %v1751_v10  ;;  %v1833_v4 = vld [vmem:[#allocation4 + $0x128] ss:$16 sps:$4 sm:$0xff]  }
  0x7d   : > { %781 = vmatmul.mubr.bf16.vlgmr.msra.gmra.mxu0 %v338_v6  ;;  %822 = vmatmul.mubr.bf16.vlgmr.msra.gmra.mxu1 %v338_v6  ;;  %v1841_v6 = vld [vmem:[#allocation4 + $0x10c] ss:$16 sps:$4 sm:$0xff]  }
  0x7e   : > { %1270 = vmatpush1.bf16.msra.mxu0 %v1746_v7  ;;  %1311 = vmatpush1.bf16.msra.mxu1 %v1749_v12  ;;  %v1836_v7 = vld [vmem:[#allocation4 + $0x100] ss:$16 sps:$4 sm:$0xff]  }
  0x7f   : > { %1271 = vmatprep.subr.bf16.mxu0 %v1754_v9  ;;  %1312 = vmatprep.subr.bf16.mxu1 %v1757_v13  ;;  %v408_v9 = vlaneseq  ;;  %v406_v12 = vld [vmem:[%s2127_s5] sm:$0xf] }
  0x80   : > { %1301 = vmatprep.mubr.bf16.mxu0 %v925_v2  ;;  %1342 = vmatprep.mubr.bf16.mxu1 %v925_v2 }
  0x81   : > { %v2088_v10 = vshrl.u32 %v408_v9, 7 }
  0x82   : > { %1272 = vmatpush1.bf16.msra.mxu0 %v1752_v11  ;;  %1313 = vmatpush1.bf16.msra.mxu1 %v1755_v14 }
  0x83   : > { %1273 = vmatprep.subr.bf16.mxu0 %v1760_v15  ;;  %1314 = vmatprep.subr.bf16.mxu1 %v1763_v16  ;;  %v410_v11 = vsub.s32 0, %v2088_v10  ;;  %v414_v13 = vsub.s32 1, %v2088_v10 }
  0x85   : > { %v411_v14 = vrot.slane %v406_v12, %v410_v11  ;;  %v415_v15 = vrot.slane %v406_v12, %v414_v13 }
  0x86   : > { %1274 = vmatpush1.bf16.msra.mxu0 %v1758_v17  ;;  %1315 = vmatpush1.bf16.msra.mxu1 %v1761_v18 }
  0x87   : > { %1275 = vmatprep.subr.bf16.mxu0 %v1766_v19  ;;  %1316 = vmatprep.subr.bf16.mxu1 %v1769_v20 }
  0x8a   : > { %1276 = vmatpush1.bf16.msra.mxu0 %v1764_v21  ;;  %1317 = vmatpush1.bf16.msra.mxu1 %v1767_v22  ;;  %v422_v22 = vsub.s32 3, %v2088_v10 }
  0x8b   : > { %1277 = vmatprep.subr.bf16.mxu0 %v1772_v23  ;;  %1318 = vmatprep.subr.bf16.mxu1 %v1775_v24 }
  0x8e   : > { %1278 = vmatpush1.bf16.msra.mxu0 %v1770_v25  ;;  %1319 = vmatpush1.bf16.msra.mxu1 %v1773_v26  ;;  %v418_v26 = vsub.s32 2, %v2088_v10 }
  0x8f   : > { %1279 = vmatprep.subr.bf16.mxu0 %v1778_v27  ;;  %1320 = vmatprep.subr.bf16.mxu1 %v1781_v28  ;;  %v423_v28 = vrot.slane %v406_v12, %v422_v22 }
  0x92   : > { %1280 = vmatpush1.bf16.msra.mxu0 %v1776_v29  ;;  %1321 = vmatpush1.bf16.msra.mxu1 %v1779_v30  ;;  %v419_v30 = vrot.slane %v406_v12, %v418_v26 }
  0x93   : > { %1281 = vmatprep.subr.bf16.mxu0 %v1784_v31  ;;  %1322 = vmatprep.subr.bf16.mxu1 %v1787_v32 }
  0x96   : > { %1282 = vmatpush1.bf16.msra.mxu0 %v1782_v33  ;;  %1323 = vmatpush1.bf16.msra.mxu1 %v1785_v34 }
  0x97   : > { %1283 = vmatprep.subr.bf16.mxu0 %v1790_v35  ;;  %1324 = vmatprep.subr.bf16.mxu1 %v1793_v36 }
  0x9a   : > { %1284 = vmatpush1.bf16.msra.mxu0 %v1788_v37  ;;  %1325 = vmatpush1.bf16.msra.mxu1 %v1791_v38 }
  0x9b   : > { %1285 = vmatprep.subr.bf16.mxu0 %v1796_v39  ;;  %1326 = vmatprep.subr.bf16.mxu1 %v1799_v40 }
  0x9e   : > { %1286 = vmatpush2.bf16.msra.mxu0 %v1794_v41  ;;  %1327 = vmatpush2.bf16.msra.mxu1 %v1797_v42  ;;  %v340_v42 = vld [vmem:[%s2130_s8] sm:$0xff] }
  0x9f   : > { %1287 = vmatprep.subr.bf16.mxu0 %v1802_v43  ;;  %1328 = vmatprep.subr.bf16.mxu1 %v1805_v44 }
  0xa2   : > { %1288 = vmatpush2.bf16.msra.mxu0 %v1800_v45  ;;  %1329 = vmatpush2.bf16.msra.mxu1 %v1803_v46 }
  0xa3   : > { %1289 = vmatprep.subr.bf16.mxu0 %v1808_v47  ;;  %1330 = vmatprep.subr.bf16.mxu1 %v1811_v48 }
  0xa6   : > { %1290 = vmatpush2.bf16.msra.mxu0 %v1806_v49  ;;  %1331 = vmatpush2.bf16.msra.mxu1 %v1809_v50 }
  0xa7   : > { %1291 = vmatprep.subr.bf16.mxu0 %v1814_v51  ;;  %1332 = vmatprep.subr.bf16.mxu1 %v1817_v52  ;;  %v1547_v52 = vld [vmem:[%s2127_s5 + $0x4] sm:$0xf] }
  0xaa   : > { %1292 = vmatpush2.bf16.msra.mxu0 %v1812_v53  ;;  %1333 = vmatpush2.bf16.msra.mxu1 %v1815_v54  ;;  %v932_v53 = vrot.slane %v1547_v52, %v410_v11  ;;  %v936_v54 = vrot.slane %v1547_v52, %v414_v13 }
  0xab   : > { %1293 = vmatprep.subr.bf16.mxu0 %v1820_v56  ;;  %1334 = vmatprep.subr.bf16.mxu1 %v1823_v58 }
  0xae   : > { %1294 = vmatpush2.bf16.msra.mxu0 %v1818_v55  ;;  %1335 = vmatpush2.bf16.msra.mxu1 %v1821_v57 }
  0xaf   : > { %1295 = vmatprep.subr.bf16.mxu0 %v1826_v59  ;;  %1336 = vmatprep.subr.bf16.mxu1 %v1829_v60 }
  0xb2   : > { %1296 = vmatpush2.bf16.msra.mxu0 %v1824_v61  ;;  %1337 = vmatpush2.bf16.msra.mxu1 %v1827_v62 }
  0xb3   : > { %1297 = vmatprep.subr.bf16.mxu0 %v1832_v63  ;;  %1338 = vmatprep.subr.bf16.mxu1 %v1835_v0 }
  0xb6   : > { %1298 = vmatpush2.bf16.msra.mxu0 %v1830_v3  ;;  %1339 = vmatpush2.bf16.msra.mxu1 %v1833_v4  ;;  %v944_v3 = vrot.slane %v1547_v52, %v422_v22 }
  0xb7   : > { %1299 = vmatprep.subr.bf16.mxu0 %v1838_v5  ;;  %1340 = vmatprep.subr.bf16.mxu1 %v1841_v6  ;;  %v940_v5 = vrot.slane %v1547_v52, %v418_v26 }
  0xba   : > { %1300 = vmatpush2.bf16.msra.mxu0 %v1836_v7  ;;  %1341 = vmatpush2.bf16.msra.mxu1 %v1839_v8 }
 0x13d   : > { %v782_v16 = vpop.f32.mrf.mxu0  ;;  %v823_v24 = vpop.f32.mrf.mxu1 }
 0x13e   : > { %v783_v17 = vadd.f32 %v782_v16, %v411_v14  ;;  %v824_v33 = vadd.f32 %v823_v24, %v419_v30  ;;  %v1546_v14 = vld [vmem:[%s2130_s8 + $0x8] sm:$0xff] }
 0x13f   : > { %v784_v18 = vpop.f32.mrf.mxu0  ;;  %v825_v27 = vpop.f32.mrf.mxu1 }
 0x140   : > { %v1542_v19 = vmul.f32 -1.442695, %v783_v17  ;;  %v785_v20 = vadd.f32 %v784_v18, %v415_v15  ;;  %v826_v32 = vadd.f32 %v825_v27, %v423_v28 }
 0x141   : > { %v786_v21 = vpop.f32.mrf.mxu0  ;;  %v827_v29 = vpop.f32.mrf.mxu1 }
 0x142   : > { %1842 = vpow2.f32 %v1542_v19  ;;  %v1543_v23 = vmul.f32 -1.442695, %v785_v20  ;;  %v1544_v34 = vmul.f32 -1.442695, %v826_v32 }
 0x143   : > { %v787_v25 = vpop.f32.mrf.mxu0  ;;  %v828_v31 = vpop.f32.mrf.mxu1 }
 0x144   : > { %1844 = vpow2.f32 %v1543_v23 }
 0x145   : > { %1846 = vtanh.f32 %v824_v33 }
 0x146   : > { %1848 = vpow2.f32 %v1544_v34 }
 0x14f   : > { %v1843_v35 = vpop.eup %1842 }
 0x150   : > { %v833_v36 = vadd.f32 1.0, %v1843_v35 }
 0x151   : > { %v1845_v37 = vpop.eup %1844 }
 0x152   : > { %1850 = vrcp.f32 %v833_v36  ;;  %v839_v38 = vadd.f32 1.0, %v1845_v37  ;;  %v1847_v39 = vpop.eup %1846 }
 0x153   : > { %v1849_v40 = vpop.eup %1848 }
 0x154   : > { %1852 = vrcp.f32 %v839_v38  ;;  %v846_v44 = vadd.f32 1.0, %v1849_v40 }
 0x156   : > { %1854 = vrcp.f32 %v846_v44 }
 0x15f   : > { %v1851_v41 = vpop.eup %1850 }
 0x160   : > { %v850_v46 = vmul.f32 %v1851_v41, %v1847_v39 }
 0x161   : > { %v1853_v43 = vpop.eup %1852 }
 0x162   : > { %v849_v45 = vmul.f32 %v1853_v43, %v340_v42 }
 0x163   : > { %v1855_v48 = vpop.eup %1854 }
 0x164   : > { %v851_v47 = vadd.f32 %v850_v46, %v849_v45 }
 0x166   : > { %1856 = vtanh.f32 %v851_v47  ;;  %855 = vst [vmem:[%s2130_s8] sm:$0xff] %v851_v47 }
 0x173   : > { %v1857_v49 = vpop.eup %1856 }
 0x174   : > { %v853_v50 = vmul.f32 %v1857_v49, %v1855_v48 }
 0x176   : > { %854 = vst [vmem:[%s2129_s7] sm:$0xff] %v853_v50  ;;  %v856_v51 = vpack.c.bf16 %v853_v50, %v853_v50 }
 0x178   : > { %1302 = vmatmul.mubr.bf16.vlgmr.msra.gmra.mxu0 %v856_v51  ;;  %1343 = vmatmul.mubr.bf16.vlgmr.msra.gmra.mxu1 %v856_v51 }
 0x238   : > { %v1303_v55 = vpop.f32.mrf.mxu0  ;;  %v1344_v56 = vpop.f32.mrf.mxu1 }
 0x239   : > { %v1304_v57 = vadd.f32 %v1303_v55, %v932_v53  ;;  %v1345_v8 = vadd.f32 %v1344_v56, %v940_v5 }
 0x23a   : > { %v1305_v58 = vpop.f32.mrf.mxu0  ;;  %v1346_v59 = vpop.f32.mrf.mxu1 }
 0x23b   : > { %v1612_v60 = vmul.f32 -1.442695, %v1304_v57  ;;  %v1306_v61 = vadd.f32 %v1305_v58, %v936_v54  ;;  %v1347_v4 = vadd.f32 %v1346_v59, %v944_v3 }
 0x23c   : > { %v1307_v62 = vpop.f32.mrf.mxu0  ;;  %v1348_v63 = vpop.f32.mrf.mxu1 }
 0x23d   : > { %1858 = vpow2.f32 %v1612_v60  ;;  %v1613_v0 = vmul.f32 -1.442695, %v1306_v61  ;;  %v1614_v6 = vmul.f32 -1.442695, %v1347_v4 }
 0x23e   : > { %v1308_v1 = vpop.f32.mrf.mxu0  ;;  %v1349_v2 = vpop.f32.mrf.mxu1 }
 0x23f   : > { %1860 = vpow2.f32 %v1613_v0 }
 0x240   : > { %1862 = vpow2.f32 %v1614_v6 }
 0x24a   : > { %v1859_v7 = vpop.eup %1858 }
 0x24b   : > { %v1354_v9 = vadd.f32 1.0, %v1859_v7 }
 0x24c   : > { %v1861_v10 = vpop.eup %1860 }
 0x24d   : > { %1864 = vrcp.f32 %v1354_v9  ;;  %v1360_v11 = vadd.f32 1.0, %v1861_v10  ;;  %v1863_v12 = vpop.eup %1862 }
 0x24e   : > { %1866 = vtanh.f32 %v1345_v8  ;;  %v1367_v17 = vadd.f32 1.0, %v1863_v12 }
 0x24f   : > { %1868 = vrcp.f32 %v1360_v11 }
 0x250   : > { %1870 = vrcp.f32 %v1367_v17 }
 0x25a   : > { %v1865_v13 = vpop.eup %1864 }
 0x25b   : > { %v1867_v15 = vpop.eup %1866 }
 0x25c   : > { %v1869_v16 = vpop.eup %1868  ;;  %v1371_v18 = vmul.f32 %v1867_v15, %v1865_v13 }
 0x25d   : > { %v1370_v19 = vmul.f32 %v1869_v16, %v1546_v14  ;;  %v1871_v21 = vpop.eup %1870 }
 0x25f   : > { %v1372_v20 = vadd.f32 %v1371_v18, %v1370_v19 }
 0x261   : > { %1872 = vtanh.f32 %v1372_v20  ;;  %1616 = vst [vmem:[%s2130_s8 + $0x8] sm:$0xff] %v1372_v20 }
 0x26e   : > { %v1873_v22 = vpop.eup %1872 }
 0x26f   : > { %v1374_v23 = vmul.f32 %v1873_v22, %v1871_v21 }
 0x271   : > { %1615 = vst [vmem:[%s2129_s7 + $0x8] sm:$0xff] %v1374_v23  ;;  %v1377_v24 = vpack.c.bf16 %v1374_v23, %v1374_v23 }
 0x273   : > { %1378 = vst [vmem:[%s2053_s30] sm:$0xf] %v1377_v24 }
 0x274 PF: > { %s21_s27 = sadd.s32 1, %s1940_s27  }
 0x275   : > { %p18_p4 = scmp.ge.s32.totalorder %s21_s27, 7  }
 0x277   :  { %20 = sbr.rel (!%p18_p4) target bundleno = 2 (0x2), region = 106 }
 0x27c   :  { %1410 = vsyncpa [#allocation3], 1 }
 0x27d   :  { %1412 = vsyncpa [#allocation3 + $0x1], 1 }
 0x27e   :  { %1413 = vsyncpa [#allocation5], 1 }

</bundles_post_ra>
